<compile_context>
chip_gen: v7x
topology: tpu7x:2x2x1
jax: 0.10.0
libtpu: 0.0.40
codegen_flags: <defaults>
</compile_context>

<pallas_src>
import functools

import jax
import jax.numpy as jnp
from jax.experimental import pallas as pl
from jax.experimental.pallas import tpu as pltpu

# ------------------------- config (small BERT) -------------------------------
VOCAB = 128
MAX_POS = 16
TYPE_VOCAB = 2
HIDDEN = 32
HEADS = 4
HEAD_DIM = HIDDEN // HEADS
INTERMEDIATE = 64
LAYERS = 2
LABELS = 4
LN_EPS = 1e-12


# ------------------------------ in-kernel helpers ------------------------------
def _layernorm(x, gamma, beta, eps):
    mu = jnp.mean(x, axis=-1, keepdims=True)
    xc = x - mu
    var = jnp.mean(xc * xc, axis=-1, keepdims=True)
    return xc * jax.lax.rsqrt(var + eps) * gamma + beta


# ------------------------------ Pallas kernels --------------------------------
def _layernorm_kernel(x_ref, g_ref, b_ref, o_ref, *, eps):
    o_ref[...] = _layernorm(x_ref[...], g_ref[...], b_ref[...], eps)


def _encoder_layer_kernel(x_ref, mask_ref,
                          wqkv_ref, bqkv_ref, wo_ref, bo_ref, g1_ref, b1_ref,
                          wi_ref, bi_ref, wo2_ref, bo2_ref, g2_ref, b2_ref,
                          o_ref, *, heads, head_dim, eps):
    # One whole transformer layer for one batch element, fully VMEM-resident.
    x = x_ref[...]                                        # (S, H) f32
    xb = x.astype(jnp.bfloat16)
    hidden = heads * head_dim
    scale = float(head_dim) ** -0.5

    # Fused QKV projection: (S, H) @ (H, 3H) on the MXU, f32 accumulation.
    qkv = (jnp.dot(xb, wqkv_ref[...], preferred_element_type=jnp.float32)
           + bqkv_ref[...])                               # (S, 3H) f32

    # Additive attention mask built in-kernel from the raw (1, S) mask.
    add_mask = (1.0 - mask_ref[...]) * -10000.0           # (1, S), bcast over q rows

    # Per-head attention (head_dim=8 is tiny; the big matmuls stay lane-dense).
    ctx_heads = []
    for h in range(heads):
        lo = h * head_dim
        qh = qkv[:, lo:lo + head_dim].astype(jnp.bfloat16)
        kh = qkv[:, hidden + lo:hidden + lo + head_dim].astype(jnp.bfloat16)
        vh = qkv[:, 2 * hidden + lo:2 * hidden + lo + head_dim].astype(jnp.bfloat16)
        s = jnp.einsum("qd,kd->qk", qh, kh,
                       preferred_element_type=jnp.float32)   # (S, S)
        s = s * scale + add_mask
        s = s - jnp.max(s, axis=-1, keepdims=True)
        p = jnp.exp(s)
        p = p / jnp.sum(p, axis=-1, keepdims=True)
        ctx_heads.append(jnp.dot(p.astype(jnp.bfloat16), vh,
                                 preferred_element_type=jnp.float32))
    ctx = jnp.concatenate(ctx_heads, axis=-1)             # (S, H) f32

    # Attention output projection + residual + LayerNorm.
    attn = (jnp.dot(ctx.astype(jnp.bfloat16), wo_ref[...],
                    preferred_element_type=jnp.float32) + bo_ref[...])
    h1 = _layernorm(attn + x, g1_ref[...], b1_ref[...], eps)

    # GELU FFN + residual + LayerNorm.
    ff = (jnp.dot(h1.astype(jnp.bfloat16), wi_ref[...],
                  preferred_element_type=jnp.float32) + bi_ref[...])
    ff = jax.nn.gelu(ff, approximate=True)
    ff = (jnp.dot(ff.astype(jnp.bfloat16), wo2_ref[...],
                  preferred_element_type=jnp.float32) + bo2_ref[...])
    o_ref[...] = _layernorm(ff + h1, g2_ref[...], b2_ref[...], eps)


def _head_kernel(h_ref, wp_ref, bp_ref, wc_ref, bc_ref, o_ref, *, sum_tensor):
    # Pooler (tanh(Linear(h[:,0]))) or seq-sum, then classifier — one launch.
    h = h_ref[...]                                        # (B, S, H) f32
    if sum_tensor:
        feat = jnp.sum(h, axis=1)                         # (B, H)
    else:
        first = h[:, 0, :]                                # (B, H)
        feat = jnp.tanh(jnp.dot(first.astype(jnp.bfloat16), wp_ref[...],
                                preferred_element_type=jnp.float32) + bp_ref[...])
    o_ref[...] = (jnp.dot(feat.astype(jnp.bfloat16), wc_ref[...],
                          preferred_element_type=jnp.float32) + bc_ref[...])


# ------------------------------ Pallas wrappers -------------------------------
def pallas_layernorm(x, gamma, beta, eps=LN_EPS, block_rows=8):
    M, H = x.shape
    g2 = gamma.reshape(1, H).astype(jnp.float32)
    b2 = beta.reshape(1, H).astype(jnp.float32)
    block_rows = min(block_rows, M)
    return pl.pallas_call(
        functools.partial(_layernorm_kernel, eps=eps),
        out_shape=jax.ShapeDtypeStruct((M, H), jnp.float32),
        grid=(pl.cdiv(M, block_rows),),
        in_specs=[
            pl.BlockSpec((block_rows, H), lambda i: (i, 0)),
            pl.BlockSpec((1, H), lambda i: (0, 0)),
            pl.BlockSpec((1, H), lambda i: (0, 0)),
        ],
        out_specs=pl.BlockSpec((block_rows, H), lambda i: (i, 0)),
        compiler_params=pltpu.CompilerParams(dimension_semantics=("parallel",)),
    )(x, g2, b2)


def pallas_encoder_layer(h, mask_b1s, lw):
    B, S, H = h.shape
    kernel = functools.partial(_encoder_layer_kernel,
                               heads=HEADS, head_dim=HEAD_DIM, eps=LN_EPS)

    def full2(b):
        return (0, 0)

    weight_specs = [pl.BlockSpec(lw[name].shape, full2)
                    for name in ("wqkv", "bqkv", "wo", "bo", "g1", "b1",
                                 "wi", "bi", "wo2", "bo2", "g2", "b2")]
    return pl.pallas_call(
        kernel,
        out_shape=jax.ShapeDtypeStruct((B, S, H), jnp.float32),
        grid=(B,),
        in_specs=[
            pl.BlockSpec((None, S, H), lambda b: (b, 0, 0)),   # activations (per batch)
            pl.BlockSpec((None, 1, S), lambda b: (b, 0, 0)),   # raw attention mask
            *weight_specs,                                     # weights (resident)
        ],
        out_specs=pl.BlockSpec((None, S, H), lambda b: (b, 0, 0)),
        compiler_params=pltpu.CompilerParams(dimension_semantics=("parallel",)),
    )(h, mask_b1s,
      lw["wqkv"], lw["bqkv"], lw["wo"], lw["bo"], lw["g1"], lw["b1"],
      lw["wi"], lw["bi"], lw["wo2"], lw["bo2"], lw["g2"], lw["b2"])


def pallas_head(h, wp, bp, wc, bc, *, sum_tensor):
    B, S, H = h.shape
    L = wc.shape[1]
    kernel = functools.partial(_head_kernel, sum_tensor=sum_tensor)
    return pl.pallas_call(
        kernel,
        out_shape=jax.ShapeDtypeStruct((B, L), jnp.float32),
        grid=(1,),
        in_specs=[
            pl.BlockSpec((B, S, H), lambda i: (0, 0, 0)),
            pl.BlockSpec((H, H), lambda i: (0, 0)),
            pl.BlockSpec((1, H), lambda i: (0, 0)),
            pl.BlockSpec((H, L), lambda i: (0, 0)),
            pl.BlockSpec((1, L), lambda i: (0, 0)),
        ],
        out_specs=pl.BlockSpec((B, L), lambda i: (0, 0)),
        compiler_params=pltpu.CompilerParams(dimension_semantics=("arbitrary",)),
    )(h, wp.astype(jnp.bfloat16), bp.reshape(1, H),
      wc.astype(jnp.bfloat16), bc.reshape(1, L))


# ------------------------------ parameters ------------------------------------
def init_params(key):
    keys = iter(jax.random.split(key, 8 + 8 * LAYERS))

    def dense(k, fan_in, fan_out):
        w = jax.random.normal(k, (fan_in, fan_out), jnp.float32) * 0.02
        b = jnp.zeros((fan_out,), jnp.float32)
        return (w, b)

    def ln():
        return (jnp.ones((HIDDEN,), jnp.float32), jnp.zeros((HIDDEN,), jnp.float32))

    params = {
        "word_emb": jax.random.normal(next(keys), (VOCAB, HIDDEN), jnp.float32) * 0.02,
        "pos_emb": jax.random.normal(next(keys), (MAX_POS, HIDDEN), jnp.float32) * 0.02,
        "type_emb": jax.random.normal(next(keys), (TYPE_VOCAB, HIDDEN), jnp.float32) * 0.02,
        "emb_ln": ln(),
        "layers": [],
        "pooler": dense(next(keys), HIDDEN, HIDDEN),
        "classifier": dense(next(keys), HIDDEN, LABELS),
    }
    for _ in range(LAYERS):
        params["layers"].append({
            "q": dense(next(keys), HIDDEN, HIDDEN),
            "k": dense(next(keys), HIDDEN, HIDDEN),
            "v": dense(next(keys), HIDDEN, HIDDEN),
            "attn_out": dense(next(keys), HIDDEN, HIDDEN),
            "attn_ln": ln(),
            "ffn_in": dense(next(keys), HIDDEN, INTERMEDIATE),
            "ffn_out": dense(next(keys), INTERMEDIATE, HIDDEN),
            "ffn_ln": ln(),
        })
    return params


def _prep_layer(layer):
    """Fuse QKV weights, cast matmul weights to bf16, reshape biases/LN params."""
    wq, bq = layer["q"]
    wk, bk = layer["k"]
    wv, bv = layer["v"]
    wo, bo = layer["attn_out"]
    wi, bi = layer["ffn_in"]
    wo2, bo2 = layer["ffn_out"]
    g1, b1 = layer["attn_ln"]
    g2, b2 = layer["ffn_ln"]
    return dict(
        wqkv=jnp.concatenate([wq, wk, wv], axis=1).astype(jnp.bfloat16),
        bqkv=jnp.concatenate([bq, bk, bv]).reshape(1, -1),
        wo=wo.astype(jnp.bfloat16), bo=bo.reshape(1, -1),
        g1=g1.reshape(1, -1), b1=b1.reshape(1, -1),
        wi=wi.astype(jnp.bfloat16), bi=bi.reshape(1, -1),
        wo2=wo2.astype(jnp.bfloat16), bo2=bo2.reshape(1, -1),
        g2=g2.reshape(1, -1), b2=b2.reshape(1, -1),
    )


# ------------------------------ forward pass -----------------------------------
def flat_bert_forward(params, input_ids, token_type_ids=None, attention_mask=None,
                      sum_tensor=False):
    B, S = input_ids.shape
    if token_type_ids is None:
        token_type_ids = jnp.zeros_like(input_ids)
    if attention_mask is None:
        attention_mask = jnp.ones_like(input_ids)

    # --- embeddings: gathers stay in XLA (data-dependent); LayerNorm in Pallas.
    pos_ids = jnp.arange(S, dtype=jnp.int32)
    emb = (jnp.take(params["word_emb"], input_ids, axis=0)
           + jnp.take(params["pos_emb"], pos_ids, axis=0)[None, :, :]
           + jnp.take(params["type_emb"], token_type_ids, axis=0))
    h2 = pallas_layernorm(emb.reshape(B * S, HIDDEN).astype(jnp.float32),
                          *params["emb_ln"])
    h = h2.reshape(B, S, HIDDEN)

    # Raw mask (B, 1, S); the -10000 additive mask is built inside the kernel.
    mask_b1s = attention_mask.astype(jnp.float32).reshape(B, 1, S)

    # --- transformer encoder: one fused Pallas kernel per layer.
    for layer in params["layers"]:
        h = pallas_encoder_layer(h, mask_b1s, _prep_layer(layer))

    # --- fused head: pooler / seq-sum + classifier.
    wp, bp = params["pooler"]
    wc, bc = params["classifier"]
    logits = pallas_head(h, wp, bp, wc, bc, sum_tensor=sum_tensor)
    return logits


# ---------------------------------- main ---------------------------------------
if __name__ == "__main__":
    key = jax.random.PRNGKey(0)
    pkey, ikey = jax.random.split(key)
    params = init_params(pkey)

    B, S = 2, 8
    input_ids = jax.random.randint(ikey, (B, S), 0, VOCAB, dtype=jnp.int32)
    token_type_ids = jnp.zeros((B, S), jnp.int32)
    attention_mask = jnp.ones((B, S), jnp.int32)

    fwd = jax.jit(flat_bert_forward, static_argnames=("sum_tensor",))

    logits = jax.block_until_ready(
        fwd(params, input_ids, token_type_ids, attention_mask, sum_tensor=False))
    logits_sum = jax.block_until_ready(
        fwd(params, input_ids, token_type_ids, attention_mask, sum_tensor=True))

    assert logits.shape == (B, LABELS) and logits_sum.shape == (B, LABELS)
    assert logits.dtype == jnp.float32
    print("KERNEL_OK")
</pallas_src>

<mosaic_0001>
module attributes {stable_mosaic.version = 11 : i64} {
  func.func @_encoder_layer_kernel(%arg0: i32, %arg1: memref<1x8x32xf32, #tpu.memory_space<vmem>>, %arg2: memref<1x1x8xf32, #tpu.memory_space<vmem>>, %arg3: memref<32x96xbf16, #tpu.memory_space<vmem>>, %arg4: memref<1x96xf32, #tpu.memory_space<vmem>>, %arg5: memref<32x32xbf16, #tpu.memory_space<vmem>>, %arg6: memref<1x32xf32, #tpu.memory_space<vmem>>, %arg7: memref<1x32xf32, #tpu.memory_space<vmem>>, %arg8: memref<1x32xf32, #tpu.memory_space<vmem>>, %arg9: memref<32x64xbf16, #tpu.memory_space<vmem>>, %arg10: memref<1x64xf32, #tpu.memory_space<vmem>>, %arg11: memref<64x32xbf16, #tpu.memory_space<vmem>>, %arg12: memref<1x32xf32, #tpu.memory_space<vmem>>, %arg13: memref<1x32xf32, #tpu.memory_space<vmem>>, %arg14: memref<1x32xf32, #tpu.memory_space<vmem>>, %arg15: memref<1x8x32xf32, #tpu.memory_space<vmem>>) attributes {dimension_semantics = [#tpu.dimension_semantics<parallel>], iteration_bounds = array<i64: 2>, scalar_prefetch = 0 : i64, scratch_operands = 0 : i64, tpu.core_type = #tpu.core_type<tc>, window_params = [{transform_indices = @transform_0, window_bounds = array<i64: 1, 8, 32>}, {transform_indices = @transform_1, window_bounds = array<i64: 1, 1, 8>}, {pipeline_mode = #tpu.pipeline_mode<synchronous>, transform_indices = @transform_2, window_bounds = array<i64: 32, 96>}, {pipeline_mode = #tpu.pipeline_mode<synchronous>, transform_indices = @transform_3, window_bounds = array<i64: 1, 96>}, {pipeline_mode = #tpu.pipeline_mode<synchronous>, transform_indices = @transform_4, window_bounds = array<i64: 32, 32>}, {pipeline_mode = #tpu.pipeline_mode<synchronous>, transform_indices = @transform_5, window_bounds = array<i64: 1, 32>}, {pipeline_mode = #tpu.pipeline_mode<synchronous>, transform_indices = @transform_6, window_bounds = array<i64: 1, 32>}, {pipeline_mode = #tpu.pipeline_mode<synchronous>, transform_indices = @transform_7, window_bounds = array<i64: 1, 32>}, {pipeline_mode = #tpu.pipeline_mode<synchronous>, transform_indices = @transform_8, window_bounds = array<i64: 32, 64>}, {pipeline_mode = #tpu.pipeline_mode<synchronous>, transform_indices = @transform_9, window_bounds = array<i64: 1, 64>}, {pipeline_mode = #tpu.pipeline_mode<synchronous>, transform_indices = @transform_10, window_bounds = array<i64: 64, 32>}, {pipeline_mode = #tpu.pipeline_mode<synchronous>, transform_indices = @transform_11, window_bounds = array<i64: 1, 32>}, {pipeline_mode = #tpu.pipeline_mode<synchronous>, transform_indices = @transform_12, window_bounds = array<i64: 1, 32>}, {pipeline_mode = #tpu.pipeline_mode<synchronous>, transform_indices = @transform_13, window_bounds = array<i64: 1, 32>}, {transform_indices = @transform_14, window_bounds = array<i64: 1, 8, 32>}]} {
    %c0 = arith.constant 0 : index
    %c0_0 = arith.constant 0 : index
    %c0_1 = arith.constant 0 : index
    %0 = vector.load %arg1[%c0, %c0_0, %c0_1] : memref<1x8x32xf32, #tpu.memory_space<vmem>>, vector<1x8x32xf32>
    %1 = vector.shape_cast %0 : vector<1x8x32xf32> to vector<8x32xf32>
    %2 = arith.truncf %1 : vector<8x32xf32> to vector<8x32xbf16>
    %c0_2 = arith.constant 0 : index
    %c0_3 = arith.constant 0 : index
    %3 = vector.load %arg3[%c0_2, %c0_3] : memref<32x96xbf16, #tpu.memory_space<vmem>>, vector<32x96xbf16>
    %cst = arith.constant dense<0.000000e+00> : vector<8x96xf32>
    %4 = tpu.matmul %2, %3, %cst {dimension_numbers = #tpu.dot_dimension_numbers<[1], [0], [0], [1], [0, 0, 1, 1], [], []>} : vector<8x32xbf16>, vector<32x96xbf16>, vector<8x96xf32> -> vector<8x96xf32>
    %c0_4 = arith.constant 0 : index
    %c0_5 = arith.constant 0 : index
    %5 = vector.load %arg4[%c0_4, %c0_5] : memref<1x96xf32, #tpu.memory_space<vmem>>, vector<1x96xf32>
    %6 = vector.broadcast %5 : vector<1x96xf32> to vector<8x96xf32>
    %7 = arith.addf %4, %6 : vector<8x96xf32>
    %c0_6 = arith.constant 0 : index
    %c0_7 = arith.constant 0 : index
    %c0_8 = arith.constant 0 : index
    %8 = vector.load %arg2[%c0_6, %c0_7, %c0_8] : memref<1x1x8xf32, #tpu.memory_space<vmem>>, vector<1x1x8xf32>
    %9 = vector.shape_cast %8 : vector<1x1x8xf32> to vector<1x8xf32>
    %cst_9 = arith.constant 1.000000e+00 : f32
    %10 = vector.broadcast %cst_9 : f32 to vector<1x8xf32>
    %11 = arith.subf %10, %9 : vector<1x8xf32>
    %cst_10 = arith.constant -1.000000e+04 : f32
    %12 = vector.broadcast %cst_10 : f32 to vector<1x8xf32>
    %13 = arith.mulf %11, %12 : vector<1x8xf32>
    %14 = vector.extract_strided_slice %7 {offsets = [0, 0], sizes = [8, 8], strides = [1, 1]} : vector<8x96xf32> to vector<8x8xf32>
    %15 = arith.truncf %14 : vector<8x8xf32> to vector<8x8xbf16>
    %16 = vector.extract_strided_slice %7 {offsets = [0, 32], sizes = [8, 8], strides = [1, 1]} : vector<8x96xf32> to vector<8x8xf32>
    %17 = arith.truncf %16 : vector<8x8xf32> to vector<8x8xbf16>
    %18 = vector.extract_strided_slice %7 {offsets = [0, 64], sizes = [8, 8], strides = [1, 1]} : vector<8x96xf32> to vector<8x8xf32>
    %19 = arith.truncf %18 : vector<8x8xf32> to vector<8x8xbf16>
    "tpu.trace_start"() <{level = 10 : i32, message = "qd,kd->qk"}> : () -> ()
    %cst_11 = arith.constant dense<0.000000e+00> : vector<8x8xf32>
    %20 = tpu.matmul %15, %17, %cst_11 {dimension_numbers = #tpu.dot_dimension_numbers<[1], [1], [0], [0], [0, 0, 1, 0], [], []>} : vector<8x8xbf16>, vector<8x8xbf16>, vector<8x8xf32> -> vector<8x8xf32>
    "tpu.trace_stop"() : () -> ()
    %cst_12 = arith.constant 0.353553385 : f32
    %21 = vector.broadcast %cst_12 : f32 to vector<8x8xf32>
    %22 = arith.mulf %20, %21 : vector<8x8xf32>
    %23 = vector.broadcast %13 : vector<1x8xf32> to vector<8x8xf32>
    %24 = arith.addf %22, %23 : vector<8x8xf32>
    %cst_13 = arith.constant dense<0xFF800000> : vector<8xf32>
    %25 = vector.multi_reduction <maximumf>, %24, %cst_13 [1] : vector<8x8xf32> to vector<8xf32>
    %26 = vector.shape_cast %25 : vector<8xf32> to vector<8x1xf32>
    %27 = vector.broadcast %26 : vector<8x1xf32> to vector<8x8xf32>
    %28 = arith.subf %24, %27 : vector<8x8xf32>
    %29 = math.exp %28 : vector<8x8xf32>
    %cst_14 = arith.constant dense<0.000000e+00> : vector<8xf32>
    %30 = vector.multi_reduction <add>, %29, %cst_14 [1] : vector<8x8xf32> to vector<8xf32>
    %31 = vector.shape_cast %30 : vector<8xf32> to vector<8x1xf32>
    %32 = vector.broadcast %31 : vector<8x1xf32> to vector<8x8xf32>
    %33 = arith.divf %29, %32 : vector<8x8xf32>
    %34 = arith.truncf %33 : vector<8x8xf32> to vector<8x8xbf16>
    %cst_15 = arith.constant dense<0.000000e+00> : vector<8x8xf32>
    %35 = tpu.matmul %34, %19, %cst_15 {dimension_numbers = #tpu.dot_dimension_numbers<[1], [0], [0], [1], [0, 0, 1, 1], [], []>} : vector<8x8xbf16>, vector<8x8xbf16>, vector<8x8xf32> -> vector<8x8xf32>
    %36 = vector.extract_strided_slice %7 {offsets = [0, 8], sizes = [8, 8], strides = [1, 1]} : vector<8x96xf32> to vector<8x8xf32>
    %37 = arith.truncf %36 : vector<8x8xf32> to vector<8x8xbf16>
    %38 = vector.extract_strided_slice %7 {offsets = [0, 40], sizes = [8, 8], strides = [1, 1]} : vector<8x96xf32> to vector<8x8xf32>
    %39 = arith.truncf %38 : vector<8x8xf32> to vector<8x8xbf16>
    %40 = vector.extract_strided_slice %7 {offsets = [0, 72], sizes = [8, 8], strides = [1, 1]} : vector<8x96xf32> to vector<8x8xf32>
    %41 = arith.truncf %40 : vector<8x8xf32> to vector<8x8xbf16>
    "tpu.trace_start"() <{level = 10 : i32, message = "qd,kd->qk"}> : () -> ()
    %cst_16 = arith.constant dense<0.000000e+00> : vector<8x8xf32>
    %42 = tpu.matmul %37, %39, %cst_16 {dimension_numbers = #tpu.dot_dimension_numbers<[1], [1], [0], [0], [0, 0, 1, 0], [], []>} : vector<8x8xbf16>, vector<8x8xbf16>, vector<8x8xf32> -> vector<8x8xf32>
    "tpu.trace_stop"() : () -> ()
    %cst_17 = arith.constant 0.353553385 : f32
    %43 = vector.broadcast %cst_17 : f32 to vector<8x8xf32>
    %44 = arith.mulf %42, %43 : vector<8x8xf32>
    %45 = vector.broadcast %13 : vector<1x8xf32> to vector<8x8xf32>
    %46 = arith.addf %44, %45 : vector<8x8xf32>
    %cst_18 = arith.constant dense<0xFF800000> : vector<8xf32>
    %47 = vector.multi_reduction <maximumf>, %46, %cst_18 [1] : vector<8x8xf32> to vector<8xf32>
    %48 = vector.shape_cast %47 : vector<8xf32> to vector<8x1xf32>
    %49 = vector.broadcast %48 : vector<8x1xf32> to vector<8x8xf32>
    %50 = arith.subf %46, %49 : vector<8x8xf32>
    %51 = math.exp %50 : vector<8x8xf32>
    %cst_19 = arith.constant dense<0.000000e+00> : vector<8xf32>
    %52 = vector.multi_reduction <add>, %51, %cst_19 [1] : vector<8x8xf32> to vector<8xf32>
    %53 = vector.shape_cast %52 : vector<8xf32> to vector<8x1xf32>
    %54 = vector.broadcast %53 : vector<8x1xf32> to vector<8x8xf32>
    %55 = arith.divf %51, %54 : vector<8x8xf32>
    %56 = arith.truncf %55 : vector<8x8xf32> to vector<8x8xbf16>
    %cst_20 = arith.constant dense<0.000000e+00> : vector<8x8xf32>
    %57 = tpu.matmul %56, %41, %cst_20 {dimension_numbers = #tpu.dot_dimension_numbers<[1], [0], [0], [1], [0, 0, 1, 1], [], []>} : vector<8x8xbf16>, vector<8x8xbf16>, vector<8x8xf32> -> vector<8x8xf32>
    %58 = vector.extract_strided_slice %7 {offsets = [0, 16], sizes = [8, 8], strides = [1, 1]} : vector<8x96xf32> to vector<8x8xf32>
    %59 = arith.truncf %58 : vector<8x8xf32> to vector<8x8xbf16>
    %60 = vector.extract_strided_slice %7 {offsets = [0, 48], sizes = [8, 8], strides = [1, 1]} : vector<8x96xf32> to vector<8x8xf32>
    %61 = arith.truncf %60 : vector<8x8xf32> to vector<8x8xbf16>
    %62 = vector.extract_strided_slice %7 {offsets = [0, 80], sizes = [8, 8], strides = [1, 1]} : vector<8x96xf32> to vector<8x8xf32>
    %63 = arith.truncf %62 : vector<8x8xf32> to vector<8x8xbf16>
    "tpu.trace_start"() <{level = 10 : i32, message = "qd,kd->qk"}> : () -> ()
    %cst_21 = arith.constant dense<0.000000e+00> : vector<8x8xf32>
    %64 = tpu.matmul %59, %61, %cst_21 {dimension_numbers = #tpu.dot_dimension_numbers<[1], [1], [0], [0], [0, 0, 1, 0], [], []>} : vector<8x8xbf16>, vector<8x8xbf16>, vector<8x8xf32> -> vector<8x8xf32>
    "tpu.trace_stop"() : () -> ()
    %cst_22 = arith.constant 0.353553385 : f32
    %65 = vector.broadcast %cst_22 : f32 to vector<8x8xf32>
    %66 = arith.mulf %64, %65 : vector<8x8xf32>
    %67 = vector.broadcast %13 : vector<1x8xf32> to vector<8x8xf32>
    %68 = arith.addf %66, %67 : vector<8x8xf32>
    %cst_23 = arith.constant dense<0xFF800000> : vector<8xf32>
    %69 = vector.multi_reduction <maximumf>, %68, %cst_23 [1] : vector<8x8xf32> to vector<8xf32>
    %70 = vector.shape_cast %69 : vector<8xf32> to vector<8x1xf32>
    %71 = vector.broadcast %70 : vector<8x1xf32> to vector<8x8xf32>
    %72 = arith.subf %68, %71 : vector<8x8xf32>
    %73 = math.exp %72 : vector<8x8xf32>
    %cst_24 = arith.constant dense<0.000000e+00> : vector<8xf32>
    %74 = vector.multi_reduction <add>, %73, %cst_24 [1] : vector<8x8xf32> to vector<8xf32>
    %75 = vector.shape_cast %74 : vector<8xf32> to vector<8x1xf32>
    %76 = vector.broadcast %75 : vector<8x1xf32> to vector<8x8xf32>
    %77 = arith.divf %73, %76 : vector<8x8xf32>
    %78 = arith.truncf %77 : vector<8x8xf32> to vector<8x8xbf16>
    %cst_25 = arith.constant dense<0.000000e+00> : vector<8x8xf32>
    %79 = tpu.matmul %78, %63, %cst_25 {dimension_numbers = #tpu.dot_dimension_numbers<[1], [0], [0], [1], [0, 0, 1, 1], [], []>} : vector<8x8xbf16>, vector<8x8xbf16>, vector<8x8xf32> -> vector<8x8xf32>
    %80 = vector.extract_strided_slice %7 {offsets = [0, 24], sizes = [8, 8], strides = [1, 1]} : vector<8x96xf32> to vector<8x8xf32>
    %81 = arith.truncf %80 : vector<8x8xf32> to vector<8x8xbf16>
    %82 = vector.extract_strided_slice %7 {offsets = [0, 56], sizes = [8, 8], strides = [1, 1]} : vector<8x96xf32> to vector<8x8xf32>
    %83 = arith.truncf %82 : vector<8x8xf32> to vector<8x8xbf16>
    %84 = vector.extract_strided_slice %7 {offsets = [0, 88], sizes = [8, 8], strides = [1, 1]} : vector<8x96xf32> to vector<8x8xf32>
    %85 = arith.truncf %84 : vector<8x8xf32> to vector<8x8xbf16>
    "tpu.trace_start"() <{level = 10 : i32, message = "qd,kd->qk"}> : () -> ()
    %cst_26 = arith.constant dense<0.000000e+00> : vector<8x8xf32>
    %86 = tpu.matmul %81, %83, %cst_26 {dimension_numbers = #tpu.dot_dimension_numbers<[1], [1], [0], [0], [0, 0, 1, 0], [], []>} : vector<8x8xbf16>, vector<8x8xbf16>, vector<8x8xf32> -> vector<8x8xf32>
    "tpu.trace_stop"() : () -> ()
    %cst_27 = arith.constant 0.353553385 : f32
    %87 = vector.broadcast %cst_27 : f32 to vector<8x8xf32>
    %88 = arith.mulf %86, %87 : vector<8x8xf32>
    %89 = vector.broadcast %13 : vector<1x8xf32> to vector<8x8xf32>
    %90 = arith.addf %88, %89 : vector<8x8xf32>
    %cst_28 = arith.constant dense<0xFF800000> : vector<8xf32>
    %91 = vector.multi_reduction <maximumf>, %90, %cst_28 [1] : vector<8x8xf32> to vector<8xf32>
    %92 = vector.shape_cast %91 : vector<8xf32> to vector<8x1xf32>
    %93 = vector.broadcast %92 : vector<8x1xf32> to vector<8x8xf32>
    %94 = arith.subf %90, %93 : vector<8x8xf32>
    %95 = math.exp %94 : vector<8x8xf32>
    %cst_29 = arith.constant dense<0.000000e+00> : vector<8xf32>
    %96 = vector.multi_reduction <add>, %95, %cst_29 [1] : vector<8x8xf32> to vector<8xf32>
    %97 = vector.shape_cast %96 : vector<8xf32> to vector<8x1xf32>
    %98 = vector.broadcast %97 : vector<8x1xf32> to vector<8x8xf32>
    %99 = arith.divf %95, %98 : vector<8x8xf32>
    %100 = arith.truncf %99 : vector<8x8xf32> to vector<8x8xbf16>
    %cst_30 = arith.constant dense<0.000000e+00> : vector<8x8xf32>
    %101 = tpu.matmul %100, %85, %cst_30 {dimension_numbers = #tpu.dot_dimension_numbers<[1], [0], [0], [1], [0, 0, 1, 1], [], []>} : vector<8x8xbf16>, vector<8x8xbf16>, vector<8x8xf32> -> vector<8x8xf32>
    %102 = tpu.concatenate %35, %57, %79, %101 in 1 : vector<8x8xf32>, vector<8x8xf32>, vector<8x8xf32>, vector<8x8xf32> -> vector<8x32xf32>
    %103 = arith.truncf %102 : vector<8x32xf32> to vector<8x32xbf16>
    %c0_31 = arith.constant 0 : index
    %c0_32 = arith.constant 0 : index
    %104 = vector.load %arg5[%c0_31, %c0_32] : memref<32x32xbf16, #tpu.memory_space<vmem>>, vector<32x32xbf16>
    %cst_33 = arith.constant dense<0.000000e+00> : vector<8x32xf32>
    %105 = tpu.matmul %103, %104, %cst_33 {dimension_numbers = #tpu.dot_dimension_numbers<[1], [0], [0], [1], [0, 0, 1, 1], [], []>} : vector<8x32xbf16>, vector<32x32xbf16>, vector<8x32xf32> -> vector<8x32xf32>
    %c0_34 = arith.constant 0 : index
    %c0_35 = arith.constant 0 : index
    %106 = vector.load %arg6[%c0_34, %c0_35] : memref<1x32xf32, #tpu.memory_space<vmem>>, vector<1x32xf32>
    %107 = vector.broadcast %106 : vector<1x32xf32> to vector<8x32xf32>
    %108 = arith.addf %105, %107 : vector<8x32xf32>
    %109 = arith.addf %108, %1 : vector<8x32xf32>
    %c0_36 = arith.constant 0 : index
    %c0_37 = arith.constant 0 : index
    %110 = vector.load %arg7[%c0_36, %c0_37] : memref<1x32xf32, #tpu.memory_space<vmem>>, vector<1x32xf32>
    %c0_38 = arith.constant 0 : index
    %c0_39 = arith.constant 0 : index
    %111 = vector.load %arg8[%c0_38, %c0_39] : memref<1x32xf32, #tpu.memory_space<vmem>>, vector<1x32xf32>
    %cst_40 = arith.constant dense<0.000000e+00> : vector<8xf32>
    %112 = vector.multi_reduction <add>, %109, %cst_40 [1] : vector<8x32xf32> to vector<8xf32>
    %113 = vector.shape_cast %112 : vector<8xf32> to vector<8x1xf32>
    %cst_41 = arith.constant 3.200000e+01 : f32
    %114 = vector.broadcast %cst_41 : f32 to vector<8x1xf32>
    %115 = arith.divf %113, %114 : vector<8x1xf32>
    %116 = vector.broadcast %115 : vector<8x1xf32> to vector<8x32xf32>
    %117 = arith.subf %109, %116 : vector<8x32xf32>
    %118 = arith.mulf %117, %117 : vector<8x32xf32>
    %cst_42 = arith.constant dense<0.000000e+00> : vector<8xf32>
    %119 = vector.multi_reduction <add>, %118, %cst_42 [1] : vector<8x32xf32> to vector<8xf32>
    %120 = vector.shape_cast %119 : vector<8xf32> to vector<8x1xf32>
    %cst_43 = arith.constant 3.200000e+01 : f32
    %121 = vector.broadcast %cst_43 : f32 to vector<8x1xf32>
    %122 = arith.divf %120, %121 : vector<8x1xf32>
    %cst_44 = arith.constant 9.99999996E-13 : f32
    %123 = vector.broadcast %cst_44 : f32 to vector<8x1xf32>
    %124 = arith.addf %122, %123 : vector<8x1xf32>
    %125 = math.rsqrt %124 : vector<8x1xf32>
    %126 = vector.broadcast %125 : vector<8x1xf32> to vector<8x32xf32>
    %127 = arith.mulf %117, %126 : vector<8x32xf32>
    %128 = vector.broadcast %110 : vector<1x32xf32> to vector<8x32xf32>
    %129 = arith.mulf %127, %128 : vector<8x32xf32>
    %130 = vector.broadcast %111 : vector<1x32xf32> to vector<8x32xf32>
    %131 = arith.addf %129, %130 : vector<8x32xf32>
    %132 = arith.truncf %131 : vector<8x32xf32> to vector<8x32xbf16>
    %c0_45 = arith.constant 0 : index
    %c0_46 = arith.constant 0 : index
    %133 = vector.load %arg9[%c0_45, %c0_46] : memref<32x64xbf16, #tpu.memory_space<vmem>>, vector<32x64xbf16>
    %cst_47 = arith.constant dense<0.000000e+00> : vector<8x64xf32>
    %134 = tpu.matmul %132, %133, %cst_47 {dimension_numbers = #tpu.dot_dimension_numbers<[1], [0], [0], [1], [0, 0, 1, 1], [], []>} : vector<8x32xbf16>, vector<32x64xbf16>, vector<8x64xf32> -> vector<8x64xf32>
    %c0_48 = arith.constant 0 : index
    %c0_49 = arith.constant 0 : index
    %135 = vector.load %arg10[%c0_48, %c0_49] : memref<1x64xf32, #tpu.memory_space<vmem>>, vector<1x64xf32>
    %136 = vector.broadcast %135 : vector<1x64xf32> to vector<8x64xf32>
    %137 = arith.addf %134, %136 : vector<8x64xf32>
    %138 = arith.mulf %137, %137 : vector<8x64xf32>
    %139 = arith.mulf %137, %138 : vector<8x64xf32>
    %cst_50 = arith.constant 4.471500e-02 : f32
    %140 = vector.broadcast %cst_50 : f32 to vector<8x64xf32>
    %141 = arith.mulf %140, %139 : vector<8x64xf32>
    %142 = arith.addf %137, %141 : vector<8x64xf32>
    %cst_51 = arith.constant 0.797884583 : f32
    %143 = vector.broadcast %cst_51 : f32 to vector<8x64xf32>
    %144 = arith.mulf %143, %142 : vector<8x64xf32>
    %145 = math.tanh %144 : vector<8x64xf32>
    %cst_52 = arith.constant 1.000000e+00 : f32
    %146 = vector.broadcast %cst_52 : f32 to vector<8x64xf32>
    %147 = arith.addf %146, %145 : vector<8x64xf32>
    %cst_53 = arith.constant 5.000000e-01 : f32
    %148 = vector.broadcast %cst_53 : f32 to vector<8x64xf32>
    %149 = arith.mulf %148, %147 : vector<8x64xf32>
    %150 = arith.mulf %137, %149 : vector<8x64xf32>
    %151 = arith.truncf %150 : vector<8x64xf32> to vector<8x64xbf16>
    %c0_54 = arith.constant 0 : index
    %c0_55 = arith.constant 0 : index
    %152 = vector.load %arg11[%c0_54, %c0_55] : memref<64x32xbf16, #tpu.memory_space<vmem>>, vector<64x32xbf16>
    %cst_56 = arith.constant dense<0.000000e+00> : vector<8x32xf32>
    %153 = tpu.matmul %151, %152, %cst_56 {dimension_numbers = #tpu.dot_dimension_numbers<[1], [0], [0], [1], [0, 0, 1, 1], [], []>} : vector<8x64xbf16>, vector<64x32xbf16>, vector<8x32xf32> -> vector<8x32xf32>
    %c0_57 = arith.constant 0 : index
    %c0_58 = arith.constant 0 : index
    %154 = vector.load %arg12[%c0_57, %c0_58] : memref<1x32xf32, #tpu.memory_space<vmem>>, vector<1x32xf32>
    %155 = vector.broadcast %154 : vector<1x32xf32> to vector<8x32xf32>
    %156 = arith.addf %153, %155 : vector<8x32xf32>
    %157 = arith.addf %156, %131 : vector<8x32xf32>
    %c0_59 = arith.constant 0 : index
    %c0_60 = arith.constant 0 : index
    %158 = vector.load %arg13[%c0_59, %c0_60] : memref<1x32xf32, #tpu.memory_space<vmem>>, vector<1x32xf32>
    %c0_61 = arith.constant 0 : index
    %c0_62 = arith.constant 0 : index
    %159 = vector.load %arg14[%c0_61, %c0_62] : memref<1x32xf32, #tpu.memory_space<vmem>>, vector<1x32xf32>
    %cst_63 = arith.constant dense<0.000000e+00> : vector<8xf32>
    %160 = vector.multi_reduction <add>, %157, %cst_63 [1] : vector<8x32xf32> to vector<8xf32>
    %161 = vector.shape_cast %160 : vector<8xf32> to vector<8x1xf32>
    %cst_64 = arith.constant 3.200000e+01 : f32
    %162 = vector.broadcast %cst_64 : f32 to vector<8x1xf32>
    %163 = arith.divf %161, %162 : vector<8x1xf32>
    %164 = vector.broadcast %163 : vector<8x1xf32> to vector<8x32xf32>
    %165 = arith.subf %157, %164 : vector<8x32xf32>
    %166 = arith.mulf %165, %165 : vector<8x32xf32>
    %cst_65 = arith.constant dense<0.000000e+00> : vector<8xf32>
    %167 = vector.multi_reduction <add>, %166, %cst_65 [1] : vector<8x32xf32> to vector<8xf32>
    %168 = vector.shape_cast %167 : vector<8xf32> to vector<8x1xf32>
    %cst_66 = arith.constant 3.200000e+01 : f32
    %169 = vector.broadcast %cst_66 : f32 to vector<8x1xf32>
    %170 = arith.divf %168, %169 : vector<8x1xf32>
    %cst_67 = arith.constant 9.99999996E-13 : f32
    %171 = vector.broadcast %cst_67 : f32 to vector<8x1xf32>
    %172 = arith.addf %170, %171 : vector<8x1xf32>
    %173 = math.rsqrt %172 : vector<8x1xf32>
    %174 = vector.broadcast %173 : vector<8x1xf32> to vector<8x32xf32>
    %175 = arith.mulf %165, %174 : vector<8x32xf32>
    %176 = vector.broadcast %158 : vector<1x32xf32> to vector<8x32xf32>
    %177 = arith.mulf %175, %176 : vector<8x32xf32>
    %178 = vector.broadcast %159 : vector<1x32xf32> to vector<8x32xf32>
    %179 = arith.addf %177, %178 : vector<8x32xf32>
    %c0_68 = arith.constant 0 : index
    %c0_69 = arith.constant 0 : index
    %c0_70 = arith.constant 0 : index
    %180 = vector.load %arg15[%c0_68, %c0_69, %c0_70] : memref<1x8x32xf32, #tpu.memory_space<vmem>>, vector<1x8x32xf32>
    %181 = vector.shape_cast %180 : vector<1x8x32xf32> to vector<8x32xf32>
    %182 = vector.shape_cast %179 : vector<8x32xf32> to vector<1x8x32xf32>
    tpu.vector_store %arg15[%c0_68, %c0_69, %c0_70], %182 {strides = array<i32>} : memref<1x8x32xf32, #tpu.memory_space<vmem>>, vector<1x8x32xf32>,
    return
  }
  func.func @transform_0(%arg0: i32) -> (i32, i32, i32) {
    %c0_i32 = arith.constant 0 : i32
    %c0_i32_0 = arith.constant 0 : i32
    %c0_i32_1 = arith.constant 0 : i32
    return %arg0, %c0_i32, %c0_i32_0 : i32, i32, i32
  }
  func.func @transform_1(%arg0: i32) -> (i32, i32, i32) {
    %c0_i32 = arith.constant 0 : i32
    %c0_i32_0 = arith.constant 0 : i32
    %c0_i32_1 = arith.constant 0 : i32
    return %arg0, %c0_i32, %c0_i32_0 : i32, i32, i32
  }
  func.func @transform_2(%arg0: i32) -> (i32, i32) {
    %c0_i32 = arith.constant 0 : i32
    %c0_i32_0 = arith.constant 0 : i32
    %c0_i32_1 = arith.constant 0 : i32
    return %c0_i32, %c0_i32_0 : i32, i32
  }
  func.func @transform_3(%arg0: i32) -> (i32, i32) {
    %c0_i32 = arith.constant 0 : i32
    %c0_i32_0 = arith.constant 0 : i32
    %c0_i32_1 = arith.constant 0 : i32
    return %c0_i32, %c0_i32_0 : i32, i32
  }
  func.func @transform_4(%arg0: i32) -> (i32, i32) {
    %c0_i32 = arith.constant 0 : i32
    %c0_i32_0 = arith.constant 0 : i32
    %c0_i32_1 = arith.constant 0 : i32
    return %c0_i32, %c0_i32_0 : i32, i32
  }
  func.func @transform_5(%arg0: i32) -> (i32, i32) {
    %c0_i32 = arith.constant 0 : i32
    %c0_i32_0 = arith.constant 0 : i32
    %c0_i32_1 = arith.constant 0 : i32
    return %c0_i32, %c0_i32_0 : i32, i32
  }
  func.func @transform_6(%arg0: i32) -> (i32, i32) {
    %c0_i32 = arith.constant 0 : i32
    %c0_i32_0 = arith.constant 0 : i32
    %c0_i32_1 = arith.constant 0 : i32
    return %c0_i32, %c0_i32_0 : i32, i32
  }
  func.func @transform_7(%arg0: i32) -> (i32, i32) {
    %c0_i32 = arith.constant 0 : i32
    %c0_i32_0 = arith.constant 0 : i32
    %c0_i32_1 = arith.constant 0 : i32
    return %c0_i32, %c0_i32_0 : i32, i32
  }
  func.func @transform_8(%arg0: i32) -> (i32, i32) {
    %c0_i32 = arith.constant 0 : i32
    %c0_i32_0 = arith.constant 0 : i32
    %c0_i32_1 = arith.constant 0 : i32
    return %c0_i32, %c0_i32_0 : i32, i32
  }
  func.func @transform_9(%arg0: i32) -> (i32, i32) {
    %c0_i32 = arith.constant 0 : i32
    %c0_i32_0 = arith.constant 0 : i32
    %c0_i32_1 = arith.constant 0 : i32
    return %c0_i32, %c0_i32_0 : i32, i32
  }
  func.func @transform_10(%arg0: i32) -> (i32, i32) {
    %c0_i32 = arith.constant 0 : i32
    %c0_i32_0 = arith.constant 0 : i32
    %c0_i32_1 = arith.constant 0 : i32
    return %c0_i32, %c0_i32_0 : i32, i32
  }
  func.func @transform_11(%arg0: i32) -> (i32, i32) {
    %c0_i32 = arith.constant 0 : i32
    %c0_i32_0 = arith.constant 0 : i32
    %c0_i32_1 = arith.constant 0 : i32
    return %c0_i32, %c0_i32_0 : i32, i32
  }
  func.func @transform_12(%arg0: i32) -> (i32, i32) {
    %c0_i32 = arith.constant 0 : i32
    %c0_i32_0 = arith.constant 0 : i32
    %c0_i32_1 = arith.constant 0 : i32
    return %c0_i32, %c0_i32_0 : i32, i32
  }
  func.func @transform_13(%arg0: i32) -> (i32, i32) {
    %c0_i32 = arith.constant 0 : i32
    %c0_i32_0 = arith.constant 0 : i32
    %c0_i32_1 = arith.constant 0 : i32
    return %c0_i32, %c0_i32_0 : i32, i32
  }
  func.func @transform_14(%arg0: i32) -> (i32, i32, i32) {
    %c0_i32 = arith.constant 0 : i32
    %c0_i32_0 = arith.constant 0 : i32
    %c0_i32_1 = arith.constant 0 : i32
    return %arg0, %c0_i32, %c0_i32_0 : i32, i32, i32
  }
}

module attributes {stable_mosaic.version = 11 : i64} {
  func.func @_layernorm_kernel(%arg0: i32, %arg1: memref<8x32xf32, #tpu.memory_space<vmem>>, %arg2: memref<1x32xf32, #tpu.memory_space<vmem>>, %arg3: memref<1x32xf32, #tpu.memory_space<vmem>>, %arg4: memref<8x32xf32, #tpu.memory_space<vmem>>) attributes {dimension_semantics = [#tpu.dimension_semantics<parallel>], iteration_bounds = array<i64: 2>, scalar_prefetch = 0 : i64, scratch_operands = 0 : i64, tpu.core_type = #tpu.core_type<tc>, window_params = [{transform_indices = @transform_0, window_bounds = array<i64: 8, 32>}, {pipeline_mode = #tpu.pipeline_mode<synchronous>, transform_indices = @transform_1, window_bounds = array<i64: 1, 32>}, {pipeline_mode = #tpu.pipeline_mode<synchronous>, transform_indices = @transform_2, window_bounds = array<i64: 1, 32>}, {transform_indices = @transform_3, window_bounds = array<i64: 8, 32>}]} {
    %c0 = arith.constant 0 : index
    %c0_0 = arith.constant 0 : index
    %0 = vector.load %arg1[%c0, %c0_0] : memref<8x32xf32, #tpu.memory_space<vmem>>, vector<8x32xf32>
    %c0_1 = arith.constant 0 : index
    %c0_2 = arith.constant 0 : index
    %1 = vector.load %arg2[%c0_1, %c0_2] : memref<1x32xf32, #tpu.memory_space<vmem>>, vector<1x32xf32>
    %c0_3 = arith.constant 0 : index
    %c0_4 = arith.constant 0 : index
    %2 = vector.load %arg3[%c0_3, %c0_4] : memref<1x32xf32, #tpu.memory_space<vmem>>, vector<1x32xf32>
    %cst = arith.constant dense<0.000000e+00> : vector<8xf32>
    %3 = vector.multi_reduction <add>, %0, %cst [1] : vector<8x32xf32> to vector<8xf32>
    %4 = vector.shape_cast %3 : vector<8xf32> to vector<8x1xf32>
    %cst_5 = arith.constant 3.200000e+01 : f32
    %5 = vector.broadcast %cst_5 : f32 to vector<8x1xf32>
    %6 = arith.divf %4, %5 : vector<8x1xf32>
    %7 = vector.broadcast %6 : vector<8x1xf32> to vector<8x32xf32>
    %8 = arith.subf %0, %7 : vector<8x32xf32>
    %9 = arith.mulf %8, %8 : vector<8x32xf32>
    %cst_6 = arith.constant dense<0.000000e+00> : vector<8xf32>
    %10 = vector.multi_reduction <add>, %9, %cst_6 [1] : vector<8x32xf32> to vector<8xf32>
    %11 = vector.shape_cast %10 : vector<8xf32> to vector<8x1xf32>
    %cst_7 = arith.constant 3.200000e+01 : f32
    %12 = vector.broadcast %cst_7 : f32 to vector<8x1xf32>
    %13 = arith.divf %11, %12 : vector<8x1xf32>
    %cst_8 = arith.constant 9.99999996E-13 : f32
    %14 = vector.broadcast %cst_8 : f32 to vector<8x1xf32>
    %15 = arith.addf %13, %14 : vector<8x1xf32>
    %16 = math.rsqrt %15 : vector<8x1xf32>
    %17 = vector.broadcast %16 : vector<8x1xf32> to vector<8x32xf32>
    %18 = arith.mulf %8, %17 : vector<8x32xf32>
    %19 = vector.broadcast %1 : vector<1x32xf32> to vector<8x32xf32>
    %20 = arith.mulf %18, %19 : vector<8x32xf32>
    %21 = vector.broadcast %2 : vector<1x32xf32> to vector<8x32xf32>
    %22 = arith.addf %20, %21 : vector<8x32xf32>
    %c0_9 = arith.constant 0 : index
    %c0_10 = arith.constant 0 : index
    %23 = vector.load %arg4[%c0_9, %c0_10] : memref<8x32xf32, #tpu.memory_space<vmem>>, vector<8x32xf32>
    tpu.vector_store %arg4[%c0_9, %c0_10], %22 {strides = array<i32>} : memref<8x32xf32, #tpu.memory_space<vmem>>, vector<8x32xf32>,
    return
  }
  func.func @transform_0(%arg0: i32) -> (i32, i32) {
    %c0_i32 = arith.constant 0 : i32
    %c0_i32_0 = arith.constant 0 : i32
    return %arg0, %c0_i32 : i32, i32
  }
  func.func @transform_1(%arg0: i32) -> (i32, i32) {
    %c0_i32 = arith.constant 0 : i32
    %c0_i32_0 = arith.constant 0 : i32
    %c0_i32_1 = arith.constant 0 : i32
    return %c0_i32, %c0_i32_0 : i32, i32
  }
  func.func @transform_2(%arg0: i32) -> (i32, i32) {
    %c0_i32 = arith.constant 0 : i32
    %c0_i32_0 = arith.constant 0 : i32
    %c0_i32_1 = arith.constant 0 : i32
    return %c0_i32, %c0_i32_0 : i32, i32
  }
  func.func @transform_3(%arg0: i32) -> (i32, i32) {
    %c0_i32 = arith.constant 0 : i32
    %c0_i32_0 = arith.constant 0 : i32
    return %arg0, %c0_i32 : i32, i32
  }
}

module attributes {stable_mosaic.version = 11 : i64} {
  func.func @_head_kernel(%arg0: i32, %arg1: memref<2x8x32xf32, #tpu.memory_space<vmem>>, %arg2: memref<32x32xbf16, #tpu.memory_space<vmem>>, %arg3: memref<1x32xf32, #tpu.memory_space<vmem>>, %arg4: memref<32x4xbf16, #tpu.memory_space<vmem>>, %arg5: memref<1x4xf32, #tpu.memory_space<vmem>>, %arg6: memref<2x4xf32, #tpu.memory_space<vmem>>) attributes {dimension_semantics = [#tpu.dimension_semantics<arbitrary>], iteration_bounds = array<i64: 1>, scalar_prefetch = 0 : i64, scratch_operands = 0 : i64, tpu.core_type = #tpu.core_type<tc>, window_params = [{pipeline_mode = #tpu.pipeline_mode<synchronous>, transform_indices = @transform_0, window_bounds = array<i64: 2, 8, 32>}, {pipeline_mode = #tpu.pipeline_mode<synchronous>, transform_indices = @transform_1, window_bounds = array<i64: 32, 32>}, {pipeline_mode = #tpu.pipeline_mode<synchronous>, transform_indices = @transform_2, window_bounds = array<i64: 1, 32>}, {pipeline_mode = #tpu.pipeline_mode<synchronous>, transform_indices = @transform_3, window_bounds = array<i64: 32, 4>}, {pipeline_mode = #tpu.pipeline_mode<synchronous>, transform_indices = @transform_4, window_bounds = array<i64: 1, 4>}, {pipeline_mode = #tpu.pipeline_mode<synchronous>, transform_indices = @transform_5, window_bounds = array<i64: 2, 4>}]} {
    %c0 = arith.constant 0 : index
    %c0_0 = arith.constant 0 : index
    %c0_1 = arith.constant 0 : index
    %0 = vector.load %arg1[%c0, %c0_0, %c0_1] : memref<2x8x32xf32, #tpu.memory_space<vmem>>, vector<2x8x32xf32>
    %1 = vector.extract_strided_slice %0 {offsets = [0, 0, 0], sizes = [2, 1, 32], strides = [1, 1, 1]} : vector<2x8x32xf32> to vector<2x1x32xf32>
    %2 = vector.shape_cast %1 : vector<2x1x32xf32> to vector<2x32xf32>
    %3 = arith.truncf %2 : vector<2x32xf32> to vector<2x32xbf16>
    %c0_2 = arith.constant 0 : index
    %c0_3 = arith.constant 0 : index
    %4 = vector.load %arg2[%c0_2, %c0_3] : memref<32x32xbf16, #tpu.memory_space<vmem>>, vector<32x32xbf16>
    %cst = arith.constant dense<0.000000e+00> : vector<2x32xf32>
    %5 = tpu.matmul %3, %4, %cst {dimension_numbers = #tpu.dot_dimension_numbers<[1], [0], [0], [1], [0, 0, 1, 1], [], []>} : vector<2x32xbf16>, vector<32x32xbf16>, vector<2x32xf32> -> vector<2x32xf32>
    %c0_4 = arith.constant 0 : index
    %c0_5 = arith.constant 0 : index
    %6 = vector.load %arg3[%c0_4, %c0_5] : memref<1x32xf32, #tpu.memory_space<vmem>>, vector<1x32xf32>
    %7 = vector.broadcast %6 : vector<1x32xf32> to vector<2x32xf32>
    %8 = arith.addf %5, %7 : vector<2x32xf32>
    %9 = math.tanh %8 : vector<2x32xf32>
    %10 = arith.truncf %9 : vector<2x32xf32> to vector<2x32xbf16>
    %c0_6 = arith.constant 0 : index
    %c0_7 = arith.constant 0 : index
    %11 = vector.load %arg4[%c0_6, %c0_7] : memref<32x4xbf16, #tpu.memory_space<vmem>>, vector<32x4xbf16>
    %cst_8 = arith.constant dense<0.000000e+00> : vector<2x4xf32>
    %12 = tpu.matmul %10, %11, %cst_8 {dimension_numbers = #tpu.dot_dimension_numbers<[1], [0], [0], [1], [0, 0, 1, 1], [], []>} : vector<2x32xbf16>, vector<32x4xbf16>, vector<2x4xf32> -> vector<2x4xf32>
    %c0_9 = arith.constant 0 : index
    %c0_10 = arith.constant 0 : index
    %13 = vector.load %arg5[%c0_9, %c0_10] : memref<1x4xf32, #tpu.memory_space<vmem>>, vector<1x4xf32>
    %14 = vector.broadcast %13 : vector<1x4xf32> to vector<2x4xf32>
    %15 = arith.addf %12, %14 : vector<2x4xf32>
    %c0_11 = arith.constant 0 : index
    %c0_12 = arith.constant 0 : index
    %16 = vector.load %arg6[%c0_11, %c0_12] : memref<2x4xf32, #tpu.memory_space<vmem>>, vector<2x4xf32>
    tpu.vector_store %arg6[%c0_11, %c0_12], %15 {strides = array<i32>} : memref<2x4xf32, #tpu.memory_space<vmem>>, vector<2x4xf32>,
    return
  }
  func.func @transform_0(%arg0: i32) -> (i32, i32, i32) {
    %c0_i32 = arith.constant 0 : i32
    %c0_i32_0 = arith.constant 0 : i32
    %c0_i32_1 = arith.constant 0 : i32
    %c0_i32_2 = arith.constant 0 : i32
    return %c0_i32, %c0_i32_0, %c0_i32_1 : i32, i32, i32
  }
  func.func @transform_1(%arg0: i32) -> (i32, i32) {
    %c0_i32 = arith.constant 0 : i32
    %c0_i32_0 = arith.constant 0 : i32
    %c0_i32_1 = arith.constant 0 : i32
    return %c0_i32, %c0_i32_0 : i32, i32
  }
  func.func @transform_2(%arg0: i32) -> (i32, i32) {
    %c0_i32 = arith.constant 0 : i32
    %c0_i32_0 = arith.constant 0 : i32
    %c0_i32_1 = arith.constant 0 : i32
    return %c0_i32, %c0_i32_0 : i32, i32
  }
  func.func @transform_3(%arg0: i32) -> (i32, i32) {
    %c0_i32 = arith.constant 0 : i32
    %c0_i32_0 = arith.constant 0 : i32
    %c0_i32_1 = arith.constant 0 : i32
    return %c0_i32, %c0_i32_0 : i32, i32
  }
  func.func @transform_4(%arg0: i32) -> (i32, i32) {
    %c0_i32 = arith.constant 0 : i32
    %c0_i32_0 = arith.constant 0 : i32
    %c0_i32_1 = arith.constant 0 : i32
    return %c0_i32, %c0_i32_0 : i32, i32
  }
  func.func @transform_5(%arg0: i32) -> (i32, i32) {
    %c0_i32 = arith.constant 0 : i32
    %c0_i32_0 = arith.constant 0 : i32
    %c0_i32_1 = arith.constant 0 : i32
    return %c0_i32, %c0_i32_0 : i32, i32
  }
}

</mosaic_0001>

<bundles_post_ra>
// kernel: flat_bert_forward.4
= control target key start
LH: loop header
LB: loop body
LE: loop exit
PB: predicated region body
PF: predicated region fallthrough
CT: control target
= control target key end

     0   :  { %s301_s12 = smov 0   ;;  %s327_s0 = inlined_call_operand.vmem [shape: f32[16,32], index: 0, kind: input, shape index: {}]   ;;  %s328_s1 = inlined_call_operand.vmem [shape: f32[1,32], index: 1, kind: input, shape index: {}]   ;;  %s329_s2 = inlined_call_operand.vmem [shape: f32[1,32], index: 2, kind: input, shape index: {}]   ;;  %s330_s3 = inlined_call_operand.vmem [shape: f32[16,32], index: 3, kind: output, shape index: {}]  }
   0x1 LB: > { %s252_s13 = sadd.s32 4294967295, %s279_s12   ;;  %p256_p0 = scmp.ge.s32.totalorder %s279_s12, 1  ;;  %s279_s12 = sphi %s301_s12, %s13_s12  }
   0x2   : > { %p136_p1 = scmp.lt.s32.totalorder %s279_s12, 3 }
   0x4   : > { %p137_p2 = pnand %p256_p0, %p136_p1 }
   0x5   : > { %p158_p3 = scmp.lt.s32.totalorder (!%p137_p2), %s252_s13, 1  ;;  %vm169_vm0 = vcmask (!%p137_p2), 261120   ;;  %v259_v11 = vld [vmem:[%s328_s1] ss:$0 sm:$0xff] (!%p137_p2) }
   0x6   : > { %140 = sbr.rel (%p137_p2) target bundleno = 331 (0x14b), region = 32  ;;  %v260_v13 = vld [vmem:[%s329_s2] ss:$0 sm:$0xff] (!%p137_p2) }
   0xd   : > { %s332_s13 = smov (!%p158_p3, %s252_s13), 1 }
   0xe   : > { %s257_s14 = sshll.u32 %s332_s13, 3 }
   0xf   : > { %s161_s17 = scalar_lea.vmem %s327_s0, %s257_s14  ;;  %s165_s24 = scalar_lea.vmem %s330_s3, %s257_s14 }
  0x10   : > { %v166_v0 = vld [vmem:[%s161_s17] sm:$0xff] }
  0x11   : > { %v170_v1 = vsel %vm169_vm0, %v166_v0, 0.0 }
  0x12   : > { %171 = vadd.xlane.f32.xlu0 %v170_v1 }
  0x9f   : > { %v172_v2 = vpop.xlane.xlu0 %171 }
  0xa0   : > { %v174_v3 = vmul.f32 0.03125, %v172_v2 }
  0xa2   : > { %v175_v4 = vsub.f32 %v166_v0, %v174_v3 }
  0xa4   : > { %v176_v5 = vmul.f32 %v175_v4, %v175_v4 }
  0xa6   : > { %v177_v6 = vsel %vm169_vm0, %v176_v5, 0.0 }
  0xa7   : > { %178 = vadd.xlane.f32.xlu0 %v177_v6 }
 0x134   : > { %v179_v7 = vpop.xlane.xlu0 %178 }
 0x135   : > { %v180_v8 = vmul.f32 0.03125, %v179_v7 }
 0x137   : > { %v181_v9 = vadd.f32 1e-12, %v180_v8 }
 0x139   : > { %271 = vrsqrt.f32 %v181_v9 }
 0x143   : > { %v272_v10 = vpop.eup %271 }
 0x144   : > { %v183_v12 = vmul.f32 %v272_v10, %v175_v4 }
 0x146   : > { %v190_v14 = vmul.f32 %v259_v11, %v183_v12 }
 0x148   : > { %v197_v15 = vadd.f32 %v260_v13, %v190_v14 }
 0x14a   : > { %198 = vst.msk [vmem:[%s165_s24] sm:$0xff] %vm169_vm0, %v197_v15 }
 0x14b PF: > { %s13_s12 = sadd.s32 1, %s279_s12  }
 0x14c   : > { %p10_p4 = scmp.ge.s32.totalorder %s13_s12, 4  }
 0x14e   :  { %12 = sbr.rel (!%p10_p4) target bundleno = 1 (0x1), region = 62 }

// kernel: flat_bert_forward.5
= control target key start
LH: loop header
LB: loop body
LE: loop exit
PB: predicated region body
PF: predicated region fallthrough
CT: control target
= control target key end

     0   :  { %s1682_s29 = smov 0   ;;  %s1858_s0 = inlined_call_operand.vmem [shape: f32[2,8,32], index: 0, kind: input, shape index: {}]   ;;  %s1859_s1 = inlined_call_operand.vmem [shape: f32[2,1,8], index: 1, kind: input, shape index: {}]   ;;  %s1860_s2 = inlined_call_operand.vmem [shape: bf16[32,96], index: 2, kind: input, shape index: {}]   ;;  %s1861_s3 = inlined_call_operand.vmem [shape: f32[1,96], index: 3, kind: input, shape index: {}]   ;;  %s1862_s4 = inlined_call_operand.vmem [shape: bf16[32,32], index: 4, kind: input, shape index: {}]   ;;  %s1863_s5 = inlined_call_operand.vmem [shape: f32[1,32], index: 5, kind: input, shape index: {}]   ;;  %s1864_s6 = inlined_call_operand.vmem [shape: f32[1,32], index: 6, kind: input, shape index: {}]   ;;  %s1865_s7 = inlined_call_operand.vmem [shape: f32[1,32], index: 7, kind: input, shape index: {}]   ;;  %s1866_s8 = inlined_call_operand.vmem [shape: bf16[32,64], index: 8, kind: input, shape index: {}]   ;;  %s1867_s9 = inlined_call_operand.vmem [shape: f32[1,64], index: 9, kind: input, shape index: {}]   ;;  %s1868_s10 = inlined_call_operand.vmem [shape: bf16[64,32], index: 10, kind: input, shape index: {}]   ;;  %s1869_s11 = inlined_call_operand.vmem [shape: f32[1,32], index: 11, kind: input, shape index: {}]   ;;  %s1870_s12 = inlined_call_operand.vmem [shape: f32[1,32], index: 12, kind: input, shape index: {}]   ;;  %s1871_s13 = inlined_call_operand.vmem [shape: f32[1,32], index: 13, kind: input, shape index: {}]   ;;  %s1872_s14 = inlined_call_operand.vmem [shape: f32[2,8,32], index: 14, kind: output, shape index: {}]  }
   0x1 LB: > { %s1374_s30 = sadd.s32 4294967295, %s1589_s29   ;;  %p1378_p0 = scmp.ge.s32.totalorder %s1589_s29, 1  ;;  %s1589_s29 = sphi %s1682_s29, %s24_s29  }
   0x2   : > { %p419_p1 = scmp.lt.s32.totalorder %s1589_s29, 3 }
   0x4   : > { %p420_p2 = pnand %p1378_p0, %p419_p1 }
   0x5   : > { %v1551_v0 = vld [vmem:[%s1860_s2] sm:$0xff] (!%p420_p2)   ;;  %v1591_v1 = vmov (!%p420_p2), 0.0   ;;  %v1552_v2 = vld [vmem:[%s1860_s2 + $0x8] sm:$0xff] (!%p420_p2)   ;;  %vm1592_vm0 = vmmov (!%p420_p2), 0   ;;  %p466_p3 = scmp.lt.s32.totalorder (!%p420_p2), %s1374_s30, 1  ;;  %vm503_vm1 = vcmask (!%p420_p2), 261120   ;;  %v603_v23 = vlaneseq (!%p420_p2) }
   0x6   : > { %423 = sbr.rel (%p420_p2) target bundleno = 2586 (0xa1a), region = 76  ;;  %1443 = vmatprep.subr.bf16.mxu0 (!%p420_p2), %v1591_v1  ;;  %1451 = vmatprep.subr.bf16.mxu1 (!%p420_p2), %v1591_v1  ;;  %v1381_v5 = vld [vmem:[%s1861_s3] ss:$0 sm:$0xff] (!%p420_p2)  ;;  %s1593_s25 = smov (!%p420_p2), 120   ;;  %vm554_vm2 = vcmask (!%p420_p2), 64512   ;;  %vm626_vm3 = vcmask (!%p420_p2), 1043456  }
   0x7   : > { %1444 = vmatpush3.bf16.msra.mxu0 (!%p420_p2), %v1551_v0  ;;  %1447 = vmatprep.mubr.msk.bf16.mxu0 (!%p420_p2), %vm1592_vm0, %v1591_v1  ;;  %s1594_s26 = smov (!%p420_p2), 96   ;;  %s1595_s27 = smov (!%p420_p2), 80   ;;  %v604_v26 = vshrl.u32 (!%p420_p2), %v603_v23, 7  ;;  %vm1019_vm4 = vcmask (!%p420_p2), 130048   ;;  %vm1021_vm5 = vcmask (!%p420_p2), 195584   ;;  %vm1237_vm6 = vcmask (!%p420_p2), 523264  }
   0x8   : > { %1445 = vmatprep.subr.bf16.mxu0 (!%p420_p2), %v1591_v1  ;;  %1453 = vmatprep.mubr.msk.bf16.mxu1 (!%p420_p2), %vm1592_vm0, %v1591_v1  ;;  %s1596_s28 = smov (!%p420_p2), 88   ;;  %s1597_s15 = smov (!%p420_p2), 72  }
   0x9   : > { %s1598_s16 = smov (!%p420_p2), 112   ;;  %s1599_s17 = smov (!%p420_p2), 104   ;;  %v605_v28 = vsub.s32 (!%p420_p2), 0, %v604_v26 }
   0xa   : > { %s1601_s23 = smov (!%p420_p2), 64   ;;  %s1602_s24 = smov (!%p420_p2), 40  }
   0xb   : > { %1446 = vmatpush3.bf16.msra.mxu0 (!%p420_p2), %v1552_v2  ;;  %s1606_s18 = smov (!%p420_p2), 24  }
   0xc   : > { %1457 = vmatprep.subr.bf16.mxu0 (!%p420_p2), %v1591_v1 }
   0xd   : > { %s1874_s30 = smov (!%p466_p3, %s1374_s30), 1 }
   0xe   : > { %s1379_s19 = sshll.u32 %s1874_s30, 3  ;;  %s472_s21 = scalar_lea.vmem %s1859_s1, %s1874_s30 }
   0xf   : > { %s469_s22 = scalar_lea.vmem %s1858_s0, %s1379_s19  ;;  %v547_v24 = vld [vmem:[%s472_s21] sm:$0x1] }
  0x10   : > { %v1712_v3 = vld [vmem:[%s469_s22] sm:$0xff]  ;;  %v548_v25 = vsub.f32 1.0, %v547_v24  ;;  %s1600_s22 = smov 56  }
  0x11   : > { %v479_v4 = vpack.c.bf16 %v1712_v3, %v1712_v3 }
  0x12   : > { %v549_v27 = vmul.f32 -10000.0, %v548_v25 }
  0x13   : > { %1448 = vmatmul.mubr.msk.bf16.vlgmr.msra.gmra.mrb[0].mxu0 %vm503_vm1, %v479_v4 }
  0x14   : > { %1459 = vmatprep.mubr.msk.bf16.mxu0 %vm1592_vm0, %v1591_v1  ;;  %v606_v29 = vrot.slane %v549_v27, %v605_v28 }
  0xe6   : > { %v541_v6 = vpop.f32.mrb[0].mxu0 }
  0xe7   : > { %v542_v7 = vadd.f32 %v1381_v5, %v541_v6  ;;  %v1449_v8 = vpop.f32.mrb[1].mxu0 }
  0xe8   : > { %v544_v9 = vpop.f32.mrb[2].mxu0 }
  0xe9   : > { %v1722_v10 = vpack.c.bf16 %v542_v7, %v542_v7  ;;  %v1450_v11 = vpop.f32.mrb[3].mxu0 }
  0xeb   : > { %670 = vrot.lane.b32.xlu1 %v1722_v10, %s1593_s25  ;;  %552 = vrot.lane.b32.xlu0 %v1722_v10, %s1594_s26  ;;  %s1603_s25 = smov 48   ;;  %s1604_s26 = smov 8  }
  0xef   : > { %784 = vrot.lane.b32.xlu1 %v1722_v10, %s1595_s27  ;;  %672 = vrot.lane.b32.xlu0 %v1722_v10, %s1596_s28 }
  0xf3   : > { %896 = vrot.lane.b32.xlu1 %v1722_v10, %s1597_s15  ;;  %782 = vrot.lane.b32.xlu0 %v1722_v10, %s1598_s16 }
  0xf7   : > { %894 = vrot.lane.b32.xlu0 %v1722_v10, %s1599_s17  ;;  %s1605_s17 = smov 16  }
 0x15d   : > { %v553_v12 = vpop.permute.xlu0 %552  ;;  %v671_v15 = vpop.permute.xlu1 %670 }
 0x15e   : > { %v559_v13 = vsel %vm554_vm2, %v553_v12, 0 }
 0x15f   : > { %1452 = vmatpush3.bf16.xpose.msra.mxu1 %v559_v13 }
 0x160   : > { %1463 = vmatprep.subr.bf16.mxu1 %v1591_v1 }
 0x161   : > { %v673_v14 = vpop.permute.xlu0 %672  ;;  %v785_v17 = vpop.permute.xlu1 %784 }
 0x162   : > { %v678_v16 = vsel %vm554_vm2, %v673_v14, 0  ;;  %v790_v18 = vsel %vm554_vm2, %v785_v17, 0 }
 0x165   : > { %v897_v19 = vpop.permute.xlu1 %896  ;;  %v783_v20 = vpop.permute.xlu0 %782 }
 0x166   : > { %1454 = vmatmul.mubr.msk.bf16.vlgmr.msra.gmra.mrb[0].mxu1 %vm554_vm2, %v1722_v10  ;;  %v902_v21 = vsel %vm554_vm2, %v897_v19, 0 }
 0x167   : > { %1464 = vmatpush3.bf16.xpose.msra.mxu1 %v678_v16  ;;  %1465 = vmatprep.mubr.msk.bf16.mxu1 %vm1592_vm0, %v1591_v1 }
 0x168   : > { %1475 = vmatprep.subr.bf16.mxu1 %v1591_v1 }
 0x169   : > { %v895_v22 = vpop.permute.xlu0 %894 }
 0x16e   : > { %1466 = vmatmul.mubr.msk.bf16.vlgmr.msra.gmra.mrb[4].mxu1 %vm554_vm2, %v671_v15 }
 0x16f   : > { %1476 = vmatpush3.bf16.xpose.msra.mxu1 %v790_v18  ;;  %1477 = vmatprep.mubr.msk.bf16.mxu1 %vm1592_vm0, %v1591_v1 }
 0x170   : > { %1487 = vmatprep.subr.bf16.mxu1 %v1591_v1 }
 0x176   : > { %1478 = vmatmul.mubr.msk.bf16.vlgmr.msra.gmra.mrb[8].mxu1 %vm554_vm2, %v783_v20 }
 0x177   : > { %1488 = vmatpush3.bf16.xpose.msra.mxu1 %v902_v21  ;;  %1489 = vmatprep.mubr.msk.bf16.mxu1 %vm1592_vm0, %v1591_v1 }
 0x178   : > { %1499 = vmatprep.subr.bf16.mxu1 %v1591_v1 }
 0x17e   : > { %1490 = vmatmul.mubr.msk.bf16.vlgmr.msra.gmra.mrb[12].mxu1 %vm554_vm2, %v895_v22 }
 0x17f   : > { %1503 = vmatprep.mubr.msk.bf16.mxu1 %vm1592_vm0, %v1591_v1 }
 0x239   : > { %v595_v30 = vpop.f32.mrb[0].mxu1 }
 0x23a   : > { %v601_v31 = vmul.f32 0.35355338, %v595_v30  ;;  %v1455_v32 = vpop.f32.mrb[1].mxu1 }
 0x23b   : > { %v598_v33 = vpop.f32.mrb[2].mxu1 }
 0x23c   : > { %v1456_v34 = vpop.f32.mrb[3].mxu1  ;;  %v608_v35 = vadd.f32 %v606_v29, %v601_v31 }
 0x23e   : > { %v609_v36 = vsel %vm554_vm2, %v608_v35, -inf }
 0x23f   : > { %610 = vmax.xlane.f32.xlu1 %v609_v36 }
 0x241   : > { %v714_v37 = vpop.f32.mrb[4].mxu1 }
 0x242   : > { %v720_v38 = vmul.f32 0.35355338, %v714_v37  ;;  %v1467_v39 = vpop.f32.mrb[5].mxu1 }
 0x243   : > { %v717_v40 = vpop.f32.mrb[6].mxu1 }
 0x244   : > { %v1468_v41 = vpop.f32.mrb[7].mxu1  ;;  %v721_v42 = vadd.f32 %v720_v38, %v606_v29 }
 0x246   : > { %v722_v43 = vsel %vm554_vm2, %v721_v42, -inf }
 0x247   : > { %723 = vmax.xlane.f32.xlu0 %v722_v43 }
 0x249   : > { %v826_v44 = vpop.f32.mrb[8].mxu1 }
 0x24a   : > { %v832_v45 = vmul.f32 0.35355338, %v826_v44  ;;  %v1479_v46 = vpop.f32.mrb[9].mxu1 }
 0x24b   : > { %v829_v47 = vpop.f32.mrb[10].mxu1 }
 0x24c   : > { %v1480_v48 = vpop.f32.mrb[11].mxu1  ;;  %v833_v49 = vadd.f32 %v832_v45, %v606_v29 }
 0x24d   : > { %v1553_v48 = vld [vmem:[%s1862_s4] sm:$0xff]  }
 0x24e   : > { %v834_v50 = vsel %vm554_vm2, %v833_v49, -inf  ;;  %1500 = vmatpush3.bf16.msra.mxu1 %v1553_v48 }
 0x24f   : > { %835 = vmax.xlane.f32.xlu0 %v834_v50  ;;  %1501 = vmatprep.subr.bf16.mxu1 %v1591_v1 }
 0x251   : > { %v938_v51 = vpop.f32.mrb[12].mxu1 }
 0x252   : > { %v944_v52 = vmul.f32 0.35355338, %v938_v51  ;;  %v1491_v53 = vpop.f32.mrb[13].mxu1 }
 0x253   : > { %v941_v54 = vpop.f32.mrb[14].mxu1 }
 0x254   : > { %v1492_v55 = vpop.f32.mrb[15].mxu1  ;;  %v945_v56 = vadd.f32 %v944_v52, %v606_v29 }
 0x256   : > { %v946_v57 = vsel %vm554_vm2, %v945_v56, -inf }
 0x257   : > { %947 = vmax.xlane.f32.xlu1 %v946_v57 }
 0x2cc   : > { %v611_v58 = vpop.xlane.xlu1 %610 }
 0x2cd   : > { %v612_v59 = vsub.f32 %v608_v35, %v611_v58 }
 0x2cf   : > { %v613_v60 = vmul.f32 1.442695, %v612_v59 }
 0x2d1   : > { %1561 = vpow2.f32 %v613_v60 }
 0x2d4   : > { %v724_v61 = vpop.xlane.xlu0 %723 }
 0x2d5   : > { %v725_v62 = vsub.f32 %v721_v42, %v724_v61 }
 0x2d7   : > { %v726_v63 = vmul.f32 1.442695, %v725_v62 }
 0x2d9   : > { %1563 = vpow2.f32 %v726_v63 }
 0x2db   : > { %v1562_v0 = vpop.eup %1561 }
 0x2dc   : > { %v836_v2 = vpop.xlane.xlu0 %835  ;;  %v615_v4 = vsel %vm554_vm2, %v1562_v0, 0.0 }
 0x2dd   : > { %v837_v5 = vsub.f32 %v833_v49, %v836_v2  ;;  %616 = vadd.xlane.f32.xlu0 %v615_v4  ;;  %v1554_v49 = vld [vmem:[%s1862_s4 + $0x8] sm:$0xff]   ;;  %v1393_v2 = vld [vmem:[%s1863_s5] ss:$0 sm:$0xff] }
 0x2de   : > { %1502 = vmatpush3.bf16.msra.mxu1 %v1554_v49 }
 0x2df   : > { %v838_v6 = vmul.f32 1.442695, %v837_v5  ;;  %1515 = vmatprep.subr.bf16.mxu1 %v1591_v1 }
 0x2e1   : > { %1565 = vpow2.f32 %v838_v6 }
 0x2e3   : > { %v1564_v7 = vpop.eup %1563 }
 0x2e4   : > { %v728_v8 = vsel %vm554_vm2, %v1564_v7, 0.0  ;;  %v948_v12 = vpop.xlane.xlu1 %947 }
 0x2e5   : > { %729 = vadd.xlane.f32.xlu1 %v728_v8  ;;  %v949_v13 = vsub.f32 %v945_v56, %v948_v12 }
 0x2e7   : > { %v950_v14 = vmul.f32 1.442695, %v949_v13 }
 0x2e9   : > { %1567 = vpow2.f32 %v950_v14 }
 0x2eb   : > { %v1566_v9 = vpop.eup %1565 }
 0x2ec   : > { %v840_v11 = vsel %vm554_vm2, %v1566_v9, 0.0 }
 0x2ed   : > { %841 = vadd.xlane.f32.xlu0 %v840_v11 }
 0x2f3   : > { %v1568_v15 = vpop.eup %1567 }
 0x2f4   : > { %v952_v16 = vsel %vm554_vm2, %v1568_v15, 0.0 }
 0x2f6   : > { %734 = vrot.lane.b32.xlu1 %v1722_v10, %s1600_s22  ;;  %s476_s22 = scalar_lea.vmem %s1872_s14, %s1379_s19 }
 0x303   : > { %621 = vrot.lane.b32.xlu0 %v1722_v10, %s1601_s23 }
 0x307   : > { %958 = vrot.lane.b32.xlu0 %v1722_v10, %s1602_s24 }
 0x31a   : > { %953 = vadd.xlane.f32.xlu1 %v952_v16 }
 0x32b   : > { %846 = vrot.lane.b32.xlu1 %v1722_v10, %s1603_s25 }
 0x36a   : > { %v617_v17 = vpop.xlane.xlu0 %616 }
 0x36b   : > { %1569 = vrcp.f32 %v617_v17  ;;  %v1555_v17 = vld [vmem:[%s1866_s8] sm:$0xff]  }
 0x372   : > { %v730_v18 = vpop.xlane.xlu1 %729 }
 0x373   : > { %1571 = vrcp.f32 %v730_v18 }
 0x375   : > { %v1570_v19 = vpop.eup %1569 }
 0x376   : > { %v619_v21 = vmul.f32 %v1570_v19, %v1562_v0  ;;  %v735_v24 = vpop.permute.xlu1 %734 }
 0x377   : > { %v740_v27 = vsel %vm626_vm3, %v735_v24, 0  ;;  %v1398_v24 = vld [vmem:[%s1865_s7] ss:$0 sm:$0xff] }
 0x378   : > { %v620_v25 = vpack.c.bf16 %v619_v21, %v619_v21 }
 0x37a   : > { %v842_v20 = vpop.xlane.xlu0 %841 }
 0x37b   : > { %1573 = vrcp.f32 %v842_v20 }
 0x37d   : > { %v1572_v26 = vpop.eup %1571 }
 0x37e   : > { %v622_v22 = vpop.permute.xlu0 %621  ;;  %v732_v10 = vmul.f32 %v1572_v26, %v1564_v7 }
 0x37f   : > { %v628_v23 = vsel %vm626_vm3, %v622_v22, 0  ;;  %v1397_v22 = vld [vmem:[%s1864_s6] ss:$0 sm:$0xff] }
 0x380   : > { %1458 = vmatpush3.bf16.msra.mxu0 %v628_v23  ;;  %v733_v28 = vpack.c.bf16 %v732_v10, %v732_v10  ;;  %v1557_v10 = vld [vmem:[%s1868_s10] sm:$0xff]  }
 0x381   : > { %1469 = vmatprep.subr.bf16.mxu0 %v1591_v1 }
 0x382   : > { %v959_v34 = vpop.permute.xlu0 %958 }
 0x383   : > { %1460 = vmatmul.mubr.msk.bf16.vlgmr.msra.gmra.mrb[4].mxu0 %vm554_vm2, %v620_v25  ;;  %v964_v36 = vsel %vm626_vm3, %v959_v34, 0 }
 0x384   : > { %1470 = vmatpush3.bf16.msra.mxu0 %v740_v27  ;;  %1471 = vmatprep.mubr.msk.bf16.mxu0 %vm1592_vm0, %v1591_v1 }
 0x385   : > { %1481 = vmatprep.subr.bf16.mxu0 %v1591_v1  ;;  %v1574_v29 = vpop.eup %1573 }
 0x386   : > { %v844_v31 = vmul.f32 %v1574_v29, %v1566_v9  ;;  %v1559_v29 = vld [vmem:[%s1868_s10 + $0x10] sm:$0xff]  }
 0x388   : > { %v845_v35 = vpack.c.bf16 %v844_v31, %v844_v31  ;;  %v1399_v31 = vld [vmem:[%s1867_s9] ss:$0 sm:$0xff] }
 0x38b   : > { %1472 = vmatmul.mubr.msk.bf16.vlgmr.msra.gmra.mrb[8].mxu0 %vm554_vm2, %v733_v28  ;;  %v1558_v28 = vld [vmem:[%s1868_s10 + $0x8] sm:$0xff]  }
 0x38c   : > { %1483 = vmatprep.mubr.msk.bf16.mxu0 %vm1592_vm0, %v1591_v1 }
 0x3a7   : > { %v954_v30 = vpop.xlane.xlu1 %953 }
 0x3a8   : > { %1575 = vrcp.f32 %v954_v30  ;;  %v1560_v30 = vld [vmem:[%s1868_s10 + $0x18] sm:$0xff]  }
 0x3ab   : > { %v847_v32 = vpop.permute.xlu1 %846 }
 0x3ac   : > { %v852_v33 = vsel %vm626_vm3, %v847_v32, 0 }
 0x3ad   : > { %1482 = vmatpush3.bf16.msra.mxu0 %v852_v33 }
 0x3ae   : > { %1493 = vmatprep.subr.bf16.mxu0 %v1591_v1 }
 0x3b0   : > { %1484 = vmatmul.mubr.msk.bf16.vlgmr.msra.gmra.mrb[12].mxu0 %vm554_vm2, %v845_v35 }
 0x3b1   : > { %1494 = vmatpush3.bf16.msra.mxu0 %v964_v36  ;;  %1495 = vmatprep.mubr.msk.bf16.mxu0 %vm1592_vm0, %v1591_v1 }
 0x3b2   : > { %v1576_v37 = vpop.eup %1575  ;;  %1507 = vmatprep.subr.bf16.mxu0 %v1591_v1 }
 0x3b3   : > { %v956_v38 = vmul.f32 %v1576_v37, %v1568_v15 }
 0x3b5   : > { %v957_v39 = vpack.c.bf16 %v956_v38, %v956_v38 }
 0x3b8   : > { %1496 = vmatmul.mubr.msk.bf16.vlgmr.msra.gmra.mrb[16].mxu0 %vm554_vm2, %v957_v39 }
 0x3b9   : > { %1511 = vmatprep.mubr.msk.bf16.mxu0 %vm1592_vm0, %v1591_v1  ;;  %1508 = vmatpush3.bf16.msra.mxu0 %v1555_v17 }
 0x3ba   : > { %1509 = vmatprep.subr.bf16.mxu0 %v1591_v1 }
 0x456   : > { %v664_v40 = vpop.f32.mrb[4].mxu0 }
 0x457   : > { %v1461_v41 = vpop.f32.mrb[5].mxu0 }
 0x458   : > { %v667_v42 = vpop.f32.mrb[6].mxu0 }
 0x459   : > { %v1462_v43 = vpop.f32.mrb[7].mxu0 }
 0x45e   : > { %v776_v44 = vpop.f32.mrb[8].mxu0 }
 0x45f   : > { %1007 = vrot.lane.b32.xlu1 %v776_v44, %s1604_s26  ;;  %v1473_v45 = vpop.f32.mrb[9].mxu0 }
 0x460   : > { %v779_v46 = vpop.f32.mrb[10].mxu0 }
 0x461   : > { %v1474_v47 = vpop.f32.mrb[11].mxu0  ;;  %v1403_v46 = vld [vmem:[%s1869_s11] ss:$0 sm:$0xff] }
 0x483   : > { %v888_v50 = vpop.f32.mrb[12].mxu0 }
 0x484   : > { %1011 = vrot.lane.b32.xlu0 %v888_v50, %s1605_s17  ;;  %v1485_v51 = vpop.f32.mrb[13].mxu0 }
 0x485   : > { %v891_v52 = vpop.f32.mrb[14].mxu0 }
 0x486   : > { %v1486_v53 = vpop.f32.mrb[15].mxu0 }
 0x48b   : > { %v1000_v54 = vpop.f32.mrb[16].mxu0 }
 0x48c   : > { %1015 = vrot.lane.b32.xlu1 %v1000_v54, %s1606_s18  ;;  %v1497_v55 = vpop.f32.mrb[17].mxu0 }
 0x48d   : > { %v1003_v56 = vpop.f32.mrb[18].mxu0 }
 0x48e   : > { %v1498_v57 = vpop.f32.mrb[19].mxu0 }
 0x4d1   : > { %v1008_v58 = vpop.permute.xlu1 %1007 }
 0x4d2   : > { %v1018_v60 = vsel %vm554_vm2, %v664_v40, %v1008_v58 }
 0x4f6   : > { %v1012_v59 = vpop.permute.xlu0 %1011 }
 0x4f7   : > { %v1020_v61 = vsel %vm1019_vm4, %v1018_v60, %v1012_v59 }
 0x4fe   : > { %v1016_v62 = vpop.permute.xlu1 %1015 }
 0x4ff   : > { %v1022_v63 = vsel %vm1021_vm5, %v1020_v61, %v1016_v62 }
 0x500   : > { %v1023_v0 = vpack.c.bf16 %v1022_v63, %v1022_v63  ;;  %v1409_v63 = vld [vmem:[%s1870_s12] ss:$0 sm:$0xff] }
 0x502   : > { %1504 = vmatmul.mubr.msk.bf16.vlgmr.msra.gmra.mrb[16].mxu1 %vm503_vm1, %v1023_v0 }
 0x503   : > { %1523 = vmatprep.mubr.msk.bf16.mxu1 %vm1592_vm0, %v1591_v1  ;;  %1516 = vmatpush3.bf16.msra.mxu1 %v1557_v10 }
 0x504   : > { %1517 = vmatprep.subr.bf16.mxu1 %v1591_v1 }
 0x507   : > { %1518 = vmatpush3.bf16.msra.mxu1 %v1558_v28 }
 0x508   : > { %1519 = vmatprep.subr.bf16.mxu1 %v1591_v1 }
 0x50b   : > { %1520 = vmatpush3.bf16.msra.mxu1 %v1559_v29 }
 0x50c   : > { %1521 = vmatprep.subr.bf16.mxu1 %v1591_v1 }
 0x50f   : > { %1522 = vmatpush3.bf16.msra.mxu1 %v1560_v30 }
 0x5d5   : > { %v1084_v4 = vpop.f32.mrb[16].mxu1 }
 0x5d6   : > { %v1085_v5 = vadd.f32 %v1393_v2, %v1084_v4  ;;  %v1505_v6 = vpop.f32.mrb[17].mxu1  ;;  %v1410_v2 = vld [vmem:[%s1871_s13] ss:$0 sm:$0xff] }
 0x5d7   : > { %v1087_v7 = vpop.f32.mrb[18].mxu1 }
 0x5d8   : > { %v1506_v8 = vpop.f32.mrb[19].mxu1  ;;  %v1090_v9 = vadd.f32 %v1085_v5, %v1712_v3  ;;  %v1556_v3 = vld [vmem:[%s1866_s8 + $0x8] sm:$0xff]  }
 0x5d9   : > { %1510 = vmatpush3.bf16.msra.mxu0 %v1556_v3 }
 0x5da   : > { %v1093_v11 = vsel %vm503_vm1, %v1090_v9, 0.0 }
 0x5db   : > { %1094 = vadd.xlane.f32.xlu0 %v1093_v11 }
 0x668   : > { %v1095_v12 = vpop.xlane.xlu0 %1094 }
 0x669   : > { %v1097_v13 = vmul.f32 0.03125, %v1095_v12 }
 0x66b   : > { %v1098_v14 = vsub.f32 %v1090_v9, %v1097_v13 }
 0x66d   : > { %v1099_v15 = vmul.f32 %v1098_v14, %v1098_v14 }
 0x66f   : > { %v1100_v16 = vsel %vm503_vm1, %v1099_v15, 0.0 }
 0x670   : > { %1101 = vadd.xlane.f32.xlu1 %v1100_v16 }
 0x6fd   : > { %v1102_v18 = vpop.xlane.xlu1 %1101 }
 0x6fe   : > { %v1103_v19 = vmul.f32 0.03125, %v1102_v18 }
 0x700   : > { %v1104_v20 = vadd.f32 1e-12, %v1103_v19 }
 0x702   : > { %1577 = vrsqrt.f32 %v1104_v20 }
 0x70c   : > { %v1578_v21 = vpop.eup %1577 }
 0x70d   : > { %v1106_v23 = vmul.f32 %v1578_v21, %v1098_v14 }
 0x70f   : > { %v1113_v25 = vmul.f32 %v1397_v22, %v1106_v23 }
 0x711   : > { %v1120_v26 = vadd.f32 %v1398_v24, %v1113_v25 }
 0x713   : > { %v1121_v27 = vpack.c.bf16 %v1120_v26, %v1120_v26 }
 0x715   : > { %1512 = vmatmul.mubr.msk.bf16.vlgmr.msra.gmra.mrb[20].mxu0 %vm503_vm1, %v1121_v27 }
 0x7e8   : > { %v1182_v32 = vpop.f32.mrb[20].mxu0 }
 0x7e9   : > { %v1183_v33 = vadd.f32 %v1399_v31, %v1182_v32  ;;  %v1513_v34 = vpop.f32.mrb[21].mxu0 }
 0x7ea   : > { %v1185_v35 = vpop.f32.mrb[22].mxu0 }
 0x7eb   : > { %v1188_v36 = vmul.f32 %v1183_v33, %v1183_v33  ;;  %v1514_v37 = vpop.f32.mrb[23].mxu0 }
 0x7ed   : > { %v1189_v38 = vmul.f32 %v1188_v36, %v1183_v33 }
 0x7ef   : > { %v1190_v39 = vmul.f32 0.044715, %v1189_v38 }
 0x7f1   : > { %v1191_v40 = vadd.f32 %v1190_v39, %v1183_v33 }
 0x7f3   : > { %v1192_v41 = vmul.f32 0.7978846, %v1191_v40 }
 0x7f5   : > { %1579 = vtanh.f32 %v1192_v41 }
 0x7ff   : > { %v1580_v1 = vpop.eup %1579 }
 0x800   : > { %v1194_v42 = vadd.f32 1.0, %v1580_v1 }
 0x802   : > { %v1195_v43 = vmul.f32 0.5, %v1194_v42 }
 0x804   : > { %v1196_v44 = vmul.f32 %v1195_v43, %v1183_v33 }
 0x806   : > { %v1197_v45 = vpack.c.bf16 %v1196_v44, %v1196_v44 }
 0x808   : > { %1524 = vmatmul.mubr.msk.bf16.vlgmr.msra.gmra.mrb[20].mxu1 %vm1237_vm6, %v1197_v45 }
 0x8db   : > { %v1275_v47 = vpop.f32.mrb[20].mxu1 }
 0x8dc   : > { %v1276_v48 = vadd.f32 %v1403_v46, %v1275_v47  ;;  %v1525_v49 = vpop.f32.mrb[21].mxu1 }
 0x8dd   : > { %v1278_v50 = vpop.f32.mrb[22].mxu1 }
 0x8de   : > { %v1526_v51 = vpop.f32.mrb[23].mxu1  ;;  %v1281_v52 = vadd.f32 %v1276_v48, %v1120_v26 }
 0x8e0   : > { %v1284_v53 = vsel %vm503_vm1, %v1281_v52, 0.0 }
 0x8e1   : > { %1285 = vadd.xlane.f32.xlu0 %v1284_v53 }
 0x96e   : > { %v1286_v54 = vpop.xlane.xlu0 %1285 }
 0x96f   : > { %v1287_v55 = vmul.f32 0.03125, %v1286_v54 }
 0x971   : > { %v1288_v56 = vsub.f32 %v1281_v52, %v1287_v55 }
 0x973   : > { %v1289_v57 = vmul.f32 %v1288_v56, %v1288_v56 }
 0x975   : > { %v1290_v58 = vsel %vm503_vm1, %v1289_v57, 0.0 }
 0x976   : > { %1291 = vadd.xlane.f32.xlu0 %v1290_v58 }
 0xa03   : > { %v1292_v59 = vpop.xlane.xlu0 %1291 }
 0xa04   : > { %v1293_v60 = vmul.f32 0.03125, %v1292_v59 }
 0xa06   : > { %v1294_v61 = vadd.f32 1e-12, %v1293_v60 }
 0xa08   : > { %1581 = vrsqrt.f32 %v1294_v61 }
 0xa12   : > { %v1582_v62 = vpop.eup %1581 }
 0xa13   : > { %v1296_v0 = vmul.f32 %v1582_v62, %v1288_v56 }
 0xa15   : > { %v1303_v4 = vmul.f32 %v1409_v63, %v1296_v0 }
 0xa17   : > { %v1310_v5 = vadd.f32 %v1410_v2, %v1303_v4 }
 0xa19   : > { %1311 = vst.msk [vmem:[%s476_s22] sm:$0xff] %vm503_vm1, %v1310_v5 }
 0xa1a PF: > { %s24_s29 = sadd.s32 1, %s1589_s29  }
 0xa1b   : > { %p21_p4 = scmp.ge.s32.totalorder %s24_s29, 4  }
 0xa1d   :  { %23 = sbr.rel (!%p21_p4) target bundleno = 1 (0x1), region = 109 }

// kernel: flat_bert_forward.7
= control target key start
LH: loop header
LB: loop body
LE: loop exit
PB: predicated region body
PF: predicated region fallthrough
CT: control target
= control target key end

     0   :  { %v248_v1 = vmov 0.0   ;;  %vm249_vm0 = vmmov 0   ;;  %s319_s0 = inlined_call_operand.vmem [shape: f32[2,8,32], index: 0, kind: input, shape index: {}]   ;;  %s320_s1 = inlined_call_operand.vmem [shape: bf16[32,32], index: 1, kind: input, shape index: {}]   ;;  %s321_s2 = inlined_call_operand.vmem [shape: f32[1,32], index: 2, kind: input, shape index: {}]   ;;  %s322_s3 = inlined_call_operand.vmem [shape: bf16[32,4], index: 3, kind: input, shape index: {}]   ;;  %s323_s4 = inlined_call_operand.vmem [shape: f32[1,4], index: 4, kind: input, shape index: {}]   ;;  %s324_s5 = inlined_call_operand.hbm [shape: f32[2,4], index: 5, kind: output, shape index: {}]  }
   0x1   :  { %v218_v0 = vld [vmem:[%s320_s1] sm:$0xff]   ;;  %199 = vmatprep.subr.bf16.mxu0 %v248_v1  ;;  %207 = vmatprep.subr.bf16.mxu1 %v248_v1  ;;  %v219_v2 = vld [vmem:[%s320_s1 + $0x8] sm:$0xff]  }
   0x2   :  { %200 = vmatpush3.bf16.msra.mxu0 %v218_v0  ;;  %203 = vmatprep.mubr.msk.bf16.mxu0 %vm249_vm0, %v248_v1  ;;  %v22_v3 = vld [vmem:[%s319_s0] sm:$0xff]  ;;  %v23_v4 = vld [vmem:[%s319_s0 + $0x8] sm:$0xff] }
   0x3   :  { %201 = vmatprep.subr.bf16.mxu0 %v248_v1  ;;  %v24_v5 = vpack.c.bf16 %v22_v3, %v22_v3  ;;  %v25_v6 = vpack.c.bf16 %v23_v4, %v23_v4  ;;  %211 = vmatprep.mubr.msk.bf16.mxu1 %vm249_vm0, %v248_v1 }
   0x4   :  { %10 = vsyncpa [#allocation3], 0  ;;  %vm42_vm1 = vcmask 1041409   ;;  %vm57_vm2 = vcmask 261120   ;;  %v220_v12 = vld [vmem:[%s322_s3] sm:$0xff]   ;;  %v221_v13 = vld [vmem:[%s322_s3 + $0x8] sm:$0xff]  }
   0x5   :  { %v39_v7 = vunpack.c.l.b16 %v24_v5  ;;  %v40_v8 = vunpack.c.l.b16 %v25_v6  ;;  %208 = vmatpush3.bf16.msra.mxu1 %v220_v12  ;;  %v185_v14 = vld [vmem:[%s321_s2] ss:$0 sm:$0xff]  ;;  %s250_s3 = smov [#allocation2]   ;;  %vm169_vm3 = vcmask 25600  }
   0x6   :  { %202 = vmatpush3.bf16.msra.mxu0 %v219_v2  ;;  %209 = vmatprep.subr.bf16.mxu1 %v248_v1  ;;  %v189_v22 = vld [vmem:[%s323_s4] ss:$0 sm:$0xff]  ;;  %s177_s7 = sshll.u32 %s250_s3, 4  ;;  %s178_s7 = int_to_ptr.vmem [resolvable:$true] %s177_s7 }
   0x7   :  { %v41_v9 = vrot.slane %v40_v8, 7  ;;  %s224_s2 = scalar_lea.vmem %s178_s7, 32  ;;  %p229_p1 = scmp.lt.s32.totalorder %s178_s7, %s178_s7 }
   0x8   :  { %p225_p0 = scmp.ne.s32.totalorder %s178_s7, %s224_s2  ;;  %p230_p2 = scmp.lt.s32.totalorder %s224_s2, %s224_s2 }
   0x9   :  { %v43_v10 = vsel %vm42_vm1, %v41_v9, %v39_v7  ;;  %210 = vmatpush3.bf16.msra.mxu1 %v221_v13 }
   0xa   :  { %v44_v11 = vpack.c.b16 %v43_v10, %v43_v10  ;;  %p231_p3 = por %p230_p2, %p229_p1 }
   0xc   :  { %204 = vmatmul.mubr.msk.bf16.vlgmr.msra.gmra.mrb[0].mxu0 %vm57_vm2, %v44_v11  ;;  %p232_p4 = pnand %p231_p3, %p225_p0 }
  0xdf   :  { %v95_v15 = vpop.f32.mrb[0].mxu0 }
  0xe0   :  { %v96_v16 = vadd.f32 %v185_v14, %v95_v15  ;;  %v205_v17 = vpop.f32.mrb[1].mxu0 }
  0xe1   :  { %v98_v18 = vpop.f32.mrb[2].mxu0 }
  0xe2   :  { %222 = vtanh.f32 %v96_v16  ;;  %v206_v19 = vpop.f32.mrb[3].mxu0 }
  0xec   :  { %v223_v20 = vpop.eup %222 }
  0xed   :  { %v102_v21 = vpack.c.bf16 %v223_v20, %v223_v20 }
  0xef   :  { %212 = vmatmul.mubr.msk.bf16.vlgmr.msra.gmra.mrb[0].mxu1 %vm57_vm2, %v102_v21 }
 0x1c2   :  { %v163_v23 = vpop.f32.mrb[0].mxu1 }
 0x1c3   :  { %v164_v24 = vadd.f32 %v189_v22, %v163_v23  ;;  %v213_v25 = vpop.f32.mrb[1].mxu1 }
 0x1c4   :  { %v166_v26 = vpop.f32.mrb[2].mxu1 }
 0x1c5   :  { %v214_v27 = vpop.f32.mrb[3].mxu1  ;;  %170 = vst.msk [vmem:[#allocation2] sm:$0x3] %vm169_vm3, %v164_v24 }
 0x1c6   :  { %235 = shalt.err (!%p232_p4)
}
 0x1c7   :  { %s236_s4 = scalar_lea.hbm %s324_s5, 32 }
 0x1c8   :  { %p237_p5 = scmp.ne.s32.totalorder %s324_s5, %s236_s4  ;;  %p240_p6 = scmp.lt.u32.totalorder %s236_s4, %s324_s5 }
 0x1ca   :  { %p242_p7 = pnand %p240_p6, %p237_p5 }
 0x1cc   :  { %245 = shalt.err (!%p242_p7)
}
 0x1cd   :  { %180 = dma.vmem_to_hbm [thread:$0]  %s178_s7, 32, %s324_s5, [#allocation3]  }
 0x1ce   :  { %246 = dma.done.wait [#allocation3], 32  }
 0x1cf   :  { %247 = vsyncadd [#allocation3], 4294967264 }
 0x1d0   :  { %184 = vsyncpa [#allocation3], 1 }

</bundles_post_ra>
